<compile_context>
chip_gen: v7x
topology: tpu7x:2x2x1
jax: 0.10.0
libtpu: 0.0.40
codegen_flags: <defaults>
</compile_context>

<pallas_src>
import functools

import jax
import jax.numpy as jnp
from jax import lax
from jax.experimental import pallas as pl
from jax.experimental.pallas import tpu as pltpu

EPS = 1e-5                 # nn.BatchNorm2d default
_LANE = 128                # pad channel dims to lane width (lane-dense stores)
_TM_TARGET = 1024          # target output rows per tile
_MIN_GRID_STEPS = 4        # keep the pipeline + both v7x TensorCores busy


def _round_up(x, m):
    return (x + m - 1) // m * m


def _bytes(shape, dtype):
    n = 1
    for s in shape:
        n *= int(s)
    return n * jnp.dtype(dtype).itemsize


def _vmem_limit(block_bytes):
    # blocks are double-buffered by the pipeline; add headroom for compiler scratch.
    # Clamp to stay inside the smallest per-TC VMEM across targets (v7x: 64 MiB).
    return int(min(max(2 * block_bytes + (4 << 20), 16 << 20), 60 << 20))


def _cparams(grid_rank, block_bytes):
    return pltpu.CompilerParams(
        dimension_semantics=("parallel",) * grid_rank,
        vmem_limit_bytes=_vmem_limit(block_bytes))


# --------------------------------------------------------------------------
# Tile choosers
# --------------------------------------------------------------------------
def _pick_th(n, ho, wo):
    """Row-tile height for the in-kernel stride-1 conv: th | ho, (th*wo) % 8 == 0.
    Prefers >= _MIN_GRID_STEPS total grid steps and <= _TM_TARGET rows per tile."""
    cands = [t for t in range(1, ho + 1) if ho % t == 0 and (t * wo) % 8 == 0]
    if not cands:
        return None
    good = [t for t in cands
            if t * wo <= _TM_TARGET and n * (ho // t) >= _MIN_GRID_STEPS]
    if good:
        return max(good)
    fit = [t for t in cands if t * wo <= _TM_TARGET]
    return max(fit) if fit else min(cands)


def _pick_rows_tile(m):
    """(tm, mp) row tiling for a 2D (m, C) slab: tm % 8 == 0, tm | mp, prefer >=4 steps."""
    mp = _round_up(max(m, 8), 8)
    cands = [t for t in range(8, min(mp, _TM_TARGET) + 1, 8) if mp % t == 0]
    good = [t for t in cands if mp // t >= _MIN_GRID_STEPS]
    tm = max(good) if good else max(cands)
    return tm, mp


# --------------------------------------------------------------------------
# Pallas kernels
# --------------------------------------------------------------------------
def _conv3x3s1_stats_kernel(xp_ref, w_ref, z_ref, sum_ref, ssq_ref, acc_ref, *, th, wo):
    """Pass 1a: stride-1 3x3 conv from a resident padded image (no im2col):
    9 shifted accumulating matmuls, bf16 z writeback + per-tile channel sum/sumsq."""
    r0 = pl.program_id(1) * th                       # first output row of this tile
    acc_ref[...] = jnp.zeros_like(acc_ref)
    for kh in range(3):
        for kw in range(3):
            slab = xp_ref[0, pl.ds(r0 + kh, th), pl.ds(kw, wo), :]       # (th, wo, Cin)
            a = slab.reshape(th * wo, slab.shape[-1])
            acc_ref[...] += jnp.dot(a, w_ref[kh * 3 + kw],
                                    preferred_element_type=jnp.float32)
    acc = acc_ref[...]
    z_ref[...] = acc.astype(z_ref.dtype)             # bf16: halves the dominant stream
    # conv bias is omitted: BatchNorm over batch statistics cancels it exactly.
    sum_ref[...] = jnp.sum(acc, axis=0, keepdims=True)[None]
    ssq_ref[...] = jnp.sum(acc * acc, axis=0, keepdims=True)[None]


def _conv_im2col_stats_kernel(p_ref, w_ref, z_ref, sum_ref, ssq_ref):
    """Pass 1b (stride-2 conv1 only): folded-tap patches @ weights, bf16 z + stats.
    Padded patch rows are all-zero and bias-free -> contribute 0 to the statistics."""
    z = jnp.dot(p_ref[...], w_ref[...], preferred_element_type=jnp.float32)
    z_ref[...] = z.astype(z_ref.dtype)
    sum_ref[...] = jnp.sum(z, axis=0, keepdims=True)[None]
    ssq_ref[...] = jnp.sum(z * z, axis=0, keepdims=True)[None]


def _bn_relu_kernel(z_ref, sc_ref, sh_ref, o_ref):
    z = z_ref[...].astype(jnp.float32)
    o_ref[...] = jnp.maximum(z * sc_ref[...] + sh_ref[...], 0.0).astype(o_ref.dtype)


def _bn_add_relu_kernel(z_ref, sc_ref, sh_ref, r_ref, o_ref):
    z = z_ref[...].astype(jnp.float32)
    r = r_ref[...].astype(jnp.float32)
    o_ref[...] = jnp.maximum(z * sc_ref[...] + sh_ref[...] + r, 0.0).astype(o_ref.dtype)


def _bn_add_1x1_relu_kernel(z_ref, sc_ref, sh_ref, xr_ref, w3_ref, b3_ref, o_ref):
    # 1x1 projection fused as a matmul in the apply pass (BN normalizes conv2 only).
    res = jnp.dot(xr_ref[...], w3_ref[...], preferred_element_type=jnp.float32) + b3_ref[...]
    z = z_ref[...].astype(jnp.float32)
    o_ref[...] = jnp.maximum(z * sc_ref[...] + sh_ref[...] + res, 0.0).astype(o_ref.dtype)


# --------------------------------------------------------------------------
# pallas_call wrappers
# --------------------------------------------------------------------------
def _conv3x3s1_stats(xp, w9, *, n, ho, wo, th, cout_p):
    hp, wp, cin = xp.shape[1], xp.shape[2], xp.shape[3]
    nt = ho // th
    rows = th * wo
    m = n * ho * wo
    kernel = functools.partial(_conv3x3s1_stats_kernel, th=th, wo=wo)
    blk = (_bytes((1, hp, wp, cin), jnp.bfloat16)          # resident padded image
           + _bytes((9, cin, cout_p), jnp.bfloat16)        # resident weights
           + _bytes((rows, cout_p), jnp.bfloat16)          # z tile
           + 2 * _bytes((1, 1, cout_p), jnp.float32)       # stats
           + _bytes((rows, cout_p), jnp.float32))          # f32 accumulator scratch
    return pl.pallas_call(
        kernel,
        grid=(n, nt),
        in_specs=[pl.BlockSpec((1, hp, wp, cin), lambda b, i: (b, 0, 0, 0)),
                  pl.BlockSpec((9, cin, cout_p), lambda b, i: (0, 0, 0))],
        out_specs=(pl.BlockSpec((rows, cout_p), lambda b, i: (b * nt + i, 0)),
                   pl.BlockSpec((1, 1, cout_p), lambda b, i: (b * nt + i, 0, 0)),
                   pl.BlockSpec((1, 1, cout_p), lambda b, i: (b * nt + i, 0, 0))),
        out_shape=(jax.ShapeDtypeStruct((m, cout_p), jnp.bfloat16),
                   jax.ShapeDtypeStruct((n * nt, 1, cout_p), jnp.float32),
                   jax.ShapeDtypeStruct((n * nt, 1, cout_p), jnp.float32)),
        scratch_shapes=[pltpu.VMEM((rows, cout_p), jnp.float32)],
        compiler_params=_cparams(2, blk),
    )(xp, w9)


def _conv_im2col_stats(patches, wk, *, tm, cout_p):
    mp, kp = patches.shape
    t = mp // tm
    blk = (_bytes((tm, kp), jnp.bfloat16) + _bytes((kp, cout_p), jnp.bfloat16)
           + _bytes((tm, cout_p), jnp.bfloat16) + 2 * _bytes((1, 1, cout_p), jnp.float32))
    return pl.pallas_call(
        _conv_im2col_stats_kernel,
        grid=(t,),
        in_specs=[pl.BlockSpec((tm, kp), lambda i: (i, 0)),        # patch tile (pipelined)
                  pl.BlockSpec((kp, cout_p), lambda i: (0, 0))],   # weights, resident
        out_specs=(pl.BlockSpec((tm, cout_p), lambda i: (i, 0)),
                   pl.BlockSpec((1, 1, cout_p), lambda i: (i, 0, 0)),
                   pl.BlockSpec((1, 1, cout_p), lambda i: (i, 0, 0))),
        out_shape=(jax.ShapeDtypeStruct((mp, cout_p), jnp.bfloat16),
                   jax.ShapeDtypeStruct((t, 1, cout_p), jnp.float32),
                   jax.ShapeDtypeStruct((t, 1, cout_p), jnp.float32)),
        compiler_params=_cparams(1, blk),
    )(patches, wk)


def _bn_apply(kernel, z, scale, shift, extra, extra_specs, *, tm, cout_p, out_dtype):
    rows = z.shape[0]
    extra_bytes = 0
    for a in extra:
        if a.ndim == 2 and a.shape[0] == rows:          # row-tiled extra (xr / residual)
            extra_bytes += _bytes((tm, a.shape[1]), a.dtype)
        else:                                           # resident extra (w3 / b3)
            extra_bytes += _bytes(a.shape, a.dtype)
    blk = (_bytes((tm, cout_p), z.dtype) + 2 * _bytes((1, cout_p), jnp.float32)
           + _bytes((tm, cout_p), out_dtype) + extra_bytes)
    # TODO(synk): sweep pipeline_mode=pl.Buffered(3) on the streaming inputs for v5e.
    return pl.pallas_call(
        kernel,
        grid=(rows // tm,),
        in_specs=[pl.BlockSpec((tm, cout_p), lambda i: (i, 0)),
                  pl.BlockSpec((1, cout_p), lambda i: (0, 0)),
                  pl.BlockSpec((1, cout_p), lambda i: (0, 0))] + list(extra_specs),
        out_specs=pl.BlockSpec((tm, cout_p), lambda i: (i, 0)),
        out_shape=jax.ShapeDtypeStruct((rows, cout_p), out_dtype),
        compiler_params=_cparams(1, blk),
    )(z, scale, shift, *extra)


# --------------------------------------------------------------------------
# Plain-JAX glue: weight packing, stride-2 im2col fallback, BN fold-up
# --------------------------------------------------------------------------
def _pack_w3x3_taps(w, cin_p, cout_p):
    """torch (O, I, 3, 3) -> (9, cin_p, cout_p), zero-padded, bf16 (per-tap slabs)."""
    o, i = w.shape[0], w.shape[1]
    wt = jnp.transpose(w, (2, 3, 1, 0)).reshape(9, i, o)
    wt = jnp.pad(wt, ((0, 0), (0, cin_p - i), (0, cout_p - o)))
    return wt.astype(jnp.bfloat16)


def _pack_w3x3_folded(w, cin_img, kp, cout_p):
    """torch (O, I, 3, 3) -> (kp, cout_p) with taps folded into K, bf16."""
    wt = _pack_w3x3_taps(w, cin_img, cout_p)            # (9, cin_img, cout_p)
    wk = wt.reshape(9 * cin_img, cout_p)
    return jnp.pad(wk, ((0, kp - 9 * cin_img), (0, 0)))


def _pack_row(v, cp):
    return jnp.pad(v.astype(jnp.float32).reshape(1, -1), ((0, 0), (0, cp - v.shape[0])))


def _im2col_folded(xp, stride, ho, wo, kp):
    """Spatially-padded NHWC image -> (N*Ho*Wo, kp) bf16 patches, taps folded into K.
    Only used for the stride-2 downsampling conv1."""
    # TODO(synk): a 4-phase space-to-depth decomposition would allow the in-kernel
    # halo conv for stride 2 as well and remove this last HBM patch materialization.
    n, hp, wp, c = xp.shape
    cols = []
    for kh in range(3):
        for kw in range(3):
            sl = xp[:, kh:kh + stride * (ho - 1) + 1:stride,
                       kw:kw + stride * (wo - 1) + 1:stride, :]
            cols.append(sl.reshape(n * ho * wo, c))
    p = jnp.concatenate(cols, axis=-1)
    return jnp.pad(p, ((0, 0), (0, kp - 9 * c))).astype(jnp.bfloat16)


def _bn_scale_shift(sums, ssqs, gamma, beta, count, cout_p):
    """Fold global per-channel stats into a scale/shift row (tiny, plain JAX)."""
    s = jnp.sum(sums, axis=(0, 1))
    ss = jnp.sum(ssqs, axis=(0, 1))
    mean = s / count
    # E[x^2]-E[x]^2 in f32; clamped at 0 (see review note on cancellation for huge M).
    var = jnp.maximum(ss / count - mean * mean, 0.0)
    g = _pack_row(gamma, cout_p)[0]
    b = _pack_row(beta, cout_p)[0]
    scale = g * lax.rsqrt(var + EPS)
    shift = b - mean * scale
    return scale.reshape(1, -1), shift.reshape(1, -1)


def _conv3x3_stats(x_img, w, stride, cout_p):
    """3x3 conv (pad=1) of an NHWC bf16 image + per-tile BN stats.
    Returns (z, sums, ssqs, pass2_row_tile, (n, ho, wo), m)."""
    n, h, wd, c = x_img.shape
    ho = (h - 1) // stride + 1
    wo = (wd - 1) // stride + 1
    m = n * ho * wo
    xp = jnp.pad(x_img, ((0, 0), (1, 1), (1, 1), (0, 0)))        # spatial halo only

    th = _pick_th(n, ho, wo) if stride == 1 else None
    if th is not None:                                           # in-kernel halo conv
        w9 = _pack_w3x3_taps(w, c, cout_p)
        z, s, q = _conv3x3s1_stats(xp, w9, n=n, ho=ho, wo=wo, th=th, cout_p=cout_p)
        return z, s, q, th * wo, (n, ho, wo), m

    # strided (or awkward-shaped) conv: folded im2col + single matmul fallback
    kp = _round_up(9 * c, _LANE)                                 # lane-dense K
    tm, mp = _pick_rows_tile(m)
    patches = _im2col_folded(xp, stride, ho, wo, kp)
    if mp > m:
        patches = jnp.pad(patches, ((0, mp - m), (0, 0)))
    wk = _pack_w3x3_folded(w, c, kp, cout_p)
    z, s, q = _conv_im2col_stats(patches, wk, tm=tm, cout_p=cout_p)
    return z, s, q, tm, (n, ho, wo), m


# --------------------------------------------------------------------------
# basicblock forward
# --------------------------------------------------------------------------
def basicblock_forward(x_nchw, params, *, use_1x1conv, strides):
    # TODO(synk): when chaining blocks, keep activations NHWC/bf16 end-to-end and hoist
    # these boundary layout conversions out of the per-block path.
    x = jnp.transpose(x_nchw, (0, 2, 3, 1)).astype(jnp.bfloat16)          # NHWC bf16
    n, h, w, cin = x.shape
    cout = params["w1"].shape[0]
    cout_p = _round_up(cout, _LANE)                                       # lane-dense channels

    # ---- stage 1: conv1(stride) -> bn1 -> relu ---------------------------
    # conv1/conv2 biases are omitted: batch-stat BatchNorm cancels them exactly
    # (the f32 reference keeps them; outputs match).
    z1, s1, q1, t1, (_, ho, wo), m = _conv3x3_stats(x, params["w1"], strides, cout_p)
    sc1, sh1 = _bn_scale_shift(s1, q1, params["g1"], params["be1"], float(m), cout_p)
    y1 = _bn_apply(_bn_relu_kernel, z1, sc1, sh1, [], [],
                   tm=t1, cout_p=cout_p, out_dtype=jnp.bfloat16)
    y1_img = y1[:m].reshape(n, ho, wo, cout_p)                            # bf16, lane-padded

    # ---- stage 2: conv2 (stride-1 in-kernel halo conv) -> bn2 -> (+res) -> relu
    z2, s2, q2, t2, _, _ = _conv3x3_stats(y1_img, params["w2"], 1, cout_p)
    sc2, sh2 = _bn_scale_shift(s2, q2, params["g2"], params["be2"], float(m), cout_p)
    rows2 = z2.shape[0]

    if use_1x1conv:
        cin_p = _round_up(cin, _LANE)                 # unmasked lane-dense K for 1x1 matmul
        xr = x[:, ::strides, ::strides, :].reshape(m, cin)
        xr = jnp.pad(xr, ((0, rows2 - m), (0, cin_p - cin)))              # bf16
        w3 = jnp.transpose(params["w3"], (2, 3, 1, 0)).reshape(cin, cout)
        w3 = jnp.pad(w3, ((0, cin_p - cin), (0, cout_p - cout))).astype(jnp.bfloat16)
        b3 = _pack_row(params["b3"], cout_p)          # projection bias kept (no BN after it)
        out = _bn_apply(
            _bn_add_1x1_relu_kernel, z2, sc2, sh2,
            [xr, w3, b3],
            [pl.BlockSpec((t2, cin_p), lambda i: (i, 0)),
             pl.BlockSpec((cin_p, cout_p), lambda i: (0, 0)),
             pl.BlockSpec((1, cout_p), lambda i: (0, 0))],
            tm=t2, cout_p=cout_p, out_dtype=jnp.float32)
    else:
        assert cin == cout and strides == 1, \
            "identity residual requires input_channels == num_channels and strides == 1"
        res = jnp.pad(x.reshape(n * h * w, cin), ((0, rows2 - m), (0, cout_p - cin)))  # bf16
        out = _bn_apply(
            _bn_add_relu_kernel, z2, sc2, sh2,
            [res], [pl.BlockSpec((t2, cout_p), lambda i: (i, 0))],
            tm=t2, cout_p=cout_p, out_dtype=jnp.float32)

    out = out[:m, :cout].reshape(n, ho, wo, cout)
    return jnp.transpose(out, (0, 3, 1, 2)).astype(jnp.float32)           # NCHW boundary


# --------------------------------------------------------------------------
# Pure-JAX f32 reference (for correctness check)
# --------------------------------------------------------------------------
def _ref_forward(x, params, *, use_1x1conv, strides):
    def conv(x, w, b, stride, pad):
        y = lax.conv_general_dilated(
            x, w, (stride, stride), [(pad, pad), (pad, pad)],
            dimension_numbers=("NCHW", "OIHW", "NCHW"))
        return y + b[None, :, None, None]

    def bn(y, g, bt):
        mean = jnp.mean(y, axis=(0, 2, 3), keepdims=True)
        var = jnp.mean((y - mean) ** 2, axis=(0, 2, 3), keepdims=True)
        return g[None, :, None, None] * (y - mean) * lax.rsqrt(var + EPS) \
            + bt[None, :, None, None]

    Y = jax.nn.relu(bn(conv(x, params["w1"], params["b1"], strides, 1),
                       params["g1"], params["be1"]))
    Y = bn(conv(Y, params["w2"], params["b2"], 1, 1), params["g2"], params["be2"])
    Xr = conv(x, params["w3"], params["b3"], strides, 0) if use_1x1conv else x
    return jax.nn.relu(Y + Xr)


def _make_params(key, cin, cout, use_1x1conv):
    ks = jax.random.split(key, 6)
    p = {
        "w1": 0.1 * jax.random.normal(ks[0], (cout, cin, 3, 3), jnp.float32),
        "b1": 0.1 * jax.random.normal(ks[1], (cout,), jnp.float32),
        "w2": 0.1 * jax.random.normal(ks[2], (cout, cout, 3, 3), jnp.float32),
        "b2": 0.1 * jax.random.normal(ks[3], (cout,), jnp.float32),
        # BatchNorm2d default init: weight=1, bias=0
        "g1": jnp.ones((cout,), jnp.float32), "be1": jnp.zeros((cout,), jnp.float32),
        "g2": jnp.ones((cout,), jnp.float32), "be2": jnp.zeros((cout,), jnp.float32),
    }
    if use_1x1conv:
        p["w3"] = 0.1 * jax.random.normal(ks[4], (cout, cin, 1, 1), jnp.float32)
        p["b3"] = 0.1 * jax.random.normal(ks[5], (cout,), jnp.float32)
    return p


if __name__ == "__main__":
    key = jax.random.PRNGKey(0)
    kx, kp1, kp2 = jax.random.split(key, 3)

    x = jax.random.normal(kx, (2, 4, 16, 16), jnp.float32)   # NCHW, like PyTorch

    fwd = jax.jit(basicblock_forward, static_argnames=("use_1x1conv", "strides"))

    # config A: downsampling block (use_1x1conv=True, strides=2), 4 -> 8 channels
    pA = _make_params(kp1, 4, 8, True)
    outA = fwd(x, pA, use_1x1conv=True, strides=2)
    jax.block_until_ready(outA)
    refA = _ref_forward(x, pA, use_1x1conv=True, strides=2)
    assert outA.shape == (2, 8, 8, 8)
    # bf16 matmul operands / bf16 intermediates vs f32 reference -> relaxed tolerance
    assert jnp.allclose(outA, refA, atol=4e-2, rtol=4e-2), "mismatch vs reference (config A)"

    # config B: identity block (use_1x1conv=False, strides=1), 4 -> 4 channels
    pB = _make_params(kp2, 4, 4, False)
    outB = fwd(x, pB, use_1x1conv=False, strides=1)
    jax.block_until_ready(outB)
    refB = _ref_forward(x, pB, use_1x1conv=False, strides=1)
    assert outB.shape == (2, 4, 16, 16)
    assert jnp.allclose(outB, refB, atol=4e-2, rtol=4e-2), "mismatch vs reference (config B)"

    print("KERNEL_OK")
</pallas_src>

<mosaic_0001>
module attributes {stable_mosaic.version = 11 : i64} {
  func.func @_conv_im2col_stats_kernel(%arg0: i32, %arg1: memref<32x128xbf16, #tpu.memory_space<vmem>>, %arg2: memref<128x128xbf16, #tpu.memory_space<vmem>>, %arg3: memref<32x128xbf16, #tpu.memory_space<vmem>>, %arg4: memref<1x1x128xf32, #tpu.memory_space<vmem>>, %arg5: memref<1x1x128xf32, #tpu.memory_space<vmem>>) attributes {dimension_semantics = [#tpu.dimension_semantics<parallel>], iteration_bounds = array<i64: 4>, scalar_prefetch = 0 : i64, scratch_operands = 0 : i64, tpu.core_type = #tpu.core_type<tc>, window_params = [{transform_indices = @transform_0, window_bounds = array<i64: 32, 128>}, {pipeline_mode = #tpu.pipeline_mode<synchronous>, transform_indices = @transform_1, window_bounds = array<i64: 128, 128>}, {transform_indices = @transform_2, window_bounds = array<i64: 32, 128>}, {transform_indices = @transform_3, window_bounds = array<i64: 1, 1, 128>}, {transform_indices = @transform_4, window_bounds = array<i64: 1, 1, 128>}]} {
    %c0 = arith.constant 0 : index
    %c0_0 = arith.constant 0 : index
    %0 = vector.load %arg1[%c0, %c0_0] : memref<32x128xbf16, #tpu.memory_space<vmem>>, vector<32x128xbf16>
    %c0_1 = arith.constant 0 : index
    %c0_2 = arith.constant 0 : index
    %1 = vector.load %arg2[%c0_1, %c0_2] : memref<128x128xbf16, #tpu.memory_space<vmem>>, vector<128x128xbf16>
    %cst = arith.constant dense<0.000000e+00> : vector<32x128xf32>
    %2 = tpu.matmul %0, %1, %cst {dimension_numbers = #tpu.dot_dimension_numbers<[1], [0], [0], [1], [0, 0, 1, 1], [], []>} : vector<32x128xbf16>, vector<128x128xbf16>, vector<32x128xf32> -> vector<32x128xf32>
    %3 = arith.truncf %2 : vector<32x128xf32> to vector<32x128xbf16>
    %c0_3 = arith.constant 0 : index
    %c0_4 = arith.constant 0 : index
    %4 = vector.load %arg3[%c0_3, %c0_4] : memref<32x128xbf16, #tpu.memory_space<vmem>>, vector<32x128xbf16>
    tpu.vector_store %arg3[%c0_3, %c0_4], %3 {strides = array<i32>} : memref<32x128xbf16, #tpu.memory_space<vmem>>, vector<32x128xbf16>,
    %cst_5 = arith.constant dense<0.000000e+00> : vector<128xf32>
    %5 = vector.multi_reduction <add>, %2, %cst_5 [0] : vector<32x128xf32> to vector<128xf32>
    %6 = vector.shape_cast %5 : vector<128xf32> to vector<1x128xf32>
    %7 = vector.shape_cast %6 : vector<1x128xf32> to vector<1x1x128xf32>
    %c0_6 = arith.constant 0 : index
    %c0_7 = arith.constant 0 : index
    %c0_8 = arith.constant 0 : index
    %8 = vector.load %arg4[%c0_6, %c0_7, %c0_8] : memref<1x1x128xf32, #tpu.memory_space<vmem>>, vector<1x1x128xf32>
    tpu.vector_store %arg4[%c0_6, %c0_7, %c0_8], %7 {strides = array<i32>} : memref<1x1x128xf32, #tpu.memory_space<vmem>>, vector<1x1x128xf32>,
    %9 = arith.mulf %2, %2 : vector<32x128xf32>
    %cst_9 = arith.constant dense<0.000000e+00> : vector<128xf32>
    %10 = vector.multi_reduction <add>, %9, %cst_9 [0] : vector<32x128xf32> to vector<128xf32>
    %11 = vector.shape_cast %10 : vector<128xf32> to vector<1x128xf32>
    %12 = vector.shape_cast %11 : vector<1x128xf32> to vector<1x1x128xf32>
    %c0_10 = arith.constant 0 : index
    %c0_11 = arith.constant 0 : index
    %c0_12 = arith.constant 0 : index
    %13 = vector.load %arg5[%c0_10, %c0_11, %c0_12] : memref<1x1x128xf32, #tpu.memory_space<vmem>>, vector<1x1x128xf32>
    tpu.vector_store %arg5[%c0_10, %c0_11, %c0_12], %12 {strides = array<i32>} : memref<1x1x128xf32, #tpu.memory_space<vmem>>, vector<1x1x128xf32>,
    return
  }
  func.func @transform_0(%arg0: i32) -> (i32, i32) {
    %c0_i32 = arith.constant 0 : i32
    %c0_i32_0 = arith.constant 0 : i32
    return %arg0, %c0_i32 : i32, i32
  }
  func.func @transform_1(%arg0: i32) -> (i32, i32) {
    %c0_i32 = arith.constant 0 : i32
    %c0_i32_0 = arith.constant 0 : i32
    %c0_i32_1 = arith.constant 0 : i32
    return %c0_i32, %c0_i32_0 : i32, i32
  }
  func.func @transform_2(%arg0: i32) -> (i32, i32) {
    %c0_i32 = arith.constant 0 : i32
    %c0_i32_0 = arith.constant 0 : i32
    return %arg0, %c0_i32 : i32, i32
  }
  func.func @transform_3(%arg0: i32) -> (i32, i32, i32) {
    %c0_i32 = arith.constant 0 : i32
    %c0_i32_0 = arith.constant 0 : i32
    %c0_i32_1 = arith.constant 0 : i32
    return %arg0, %c0_i32, %c0_i32_0 : i32, i32, i32
  }
  func.func @transform_4(%arg0: i32) -> (i32, i32, i32) {
    %c0_i32 = arith.constant 0 : i32
    %c0_i32_0 = arith.constant 0 : i32
    %c0_i32_1 = arith.constant 0 : i32
    return %arg0, %c0_i32, %c0_i32_0 : i32, i32, i32
  }
}

module attributes {stable_mosaic.version = 11 : i64} {
  func.func @_bn_relu_kernel(%arg0: i32, %arg1: memref<32x128xbf16, #tpu.memory_space<vmem>>, %arg2: memref<1x128xf32, #tpu.memory_space<vmem>>, %arg3: memref<1x128xf32, #tpu.memory_space<vmem>>, %arg4: memref<32x128xbf16, #tpu.memory_space<vmem>>) attributes {dimension_semantics = [#tpu.dimension_semantics<parallel>], iteration_bounds = array<i64: 4>, scalar_prefetch = 0 : i64, scratch_operands = 0 : i64, tpu.core_type = #tpu.core_type<tc>, window_params = [{transform_indices = @transform_0, window_bounds = array<i64: 32, 128>}, {pipeline_mode = #tpu.pipeline_mode<synchronous>, transform_indices = @transform_1, window_bounds = array<i64: 1, 128>}, {pipeline_mode = #tpu.pipeline_mode<synchronous>, transform_indices = @transform_2, window_bounds = array<i64: 1, 128>}, {transform_indices = @transform_3, window_bounds = array<i64: 32, 128>}]} {
    %c0 = arith.constant 0 : index
    %c0_0 = arith.constant 0 : index
    %0 = vector.load %arg1[%c0, %c0_0] : memref<32x128xbf16, #tpu.memory_space<vmem>>, vector<32x128xbf16>
    %1 = arith.extf %0 : vector<32x128xbf16> to vector<32x128xf32>
    %c0_1 = arith.constant 0 : index
    %c0_2 = arith.constant 0 : index
    %2 = vector.load %arg2[%c0_1, %c0_2] : memref<1x128xf32, #tpu.memory_space<vmem>>, vector<1x128xf32>
    %3 = vector.broadcast %2 : vector<1x128xf32> to vector<32x128xf32>
    %4 = arith.mulf %1, %3 : vector<32x128xf32>
    %c0_3 = arith.constant 0 : index
    %c0_4 = arith.constant 0 : index
    %5 = vector.load %arg3[%c0_3, %c0_4] : memref<1x128xf32, #tpu.memory_space<vmem>>, vector<1x128xf32>
    %6 = vector.broadcast %5 : vector<1x128xf32> to vector<32x128xf32>
    %7 = arith.addf %4, %6 : vector<32x128xf32>
    %cst = arith.constant 0.000000e+00 : f32
    %8 = vector.broadcast %cst : f32 to vector<32x128xf32>
    %9 = arith.maximumf %7, %8 : vector<32x128xf32>
    %10 = arith.truncf %9 : vector<32x128xf32> to vector<32x128xbf16>
    %c0_5 = arith.constant 0 : index
    %c0_6 = arith.constant 0 : index
    %11 = vector.load %arg4[%c0_5, %c0_6] : memref<32x128xbf16, #tpu.memory_space<vmem>>, vector<32x128xbf16>
    tpu.vector_store %arg4[%c0_5, %c0_6], %10 {strides = array<i32>} : memref<32x128xbf16, #tpu.memory_space<vmem>>, vector<32x128xbf16>,
    return
  }
  func.func @transform_0(%arg0: i32) -> (i32, i32) {
    %c0_i32 = arith.constant 0 : i32
    %c0_i32_0 = arith.constant 0 : i32
    return %arg0, %c0_i32 : i32, i32
  }
  func.func @transform_1(%arg0: i32) -> (i32, i32) {
    %c0_i32 = arith.constant 0 : i32
    %c0_i32_0 = arith.constant 0 : i32
    %c0_i32_1 = arith.constant 0 : i32
    return %c0_i32, %c0_i32_0 : i32, i32
  }
  func.func @transform_2(%arg0: i32) -> (i32, i32) {
    %c0_i32 = arith.constant 0 : i32
    %c0_i32_0 = arith.constant 0 : i32
    %c0_i32_1 = arith.constant 0 : i32
    return %c0_i32, %c0_i32_0 : i32, i32
  }
  func.func @transform_3(%arg0: i32) -> (i32, i32) {
    %c0_i32 = arith.constant 0 : i32
    %c0_i32_0 = arith.constant 0 : i32
    return %arg0, %c0_i32 : i32, i32
  }
}

module attributes {stable_mosaic.version = 11 : i64} {
  func.func @_conv3x3s1_stats_kernel(%arg0: i32, %arg1: i32, %arg2: memref<1x10x10x128xbf16, #tpu.memory_space<vmem>>, %arg3: memref<9x128x128xbf16, #tpu.memory_space<vmem>>, %arg4: memref<32x128xbf16, #tpu.memory_space<vmem>>, %arg5: memref<1x1x128xf32, #tpu.memory_space<vmem>>, %arg6: memref<1x1x128xf32, #tpu.memory_space<vmem>>, %arg7: memref<32x128xf32, #tpu.memory_space<vmem>>) attributes {dimension_semantics = [#tpu.dimension_semantics<parallel>, #tpu.dimension_semantics<parallel>], iteration_bounds = array<i64: 2, 2>, scalar_prefetch = 0 : i64, scratch_operands = 1 : i64, tpu.core_type = #tpu.core_type<tc>, window_params = [{transform_indices = @transform_0, window_bounds = array<i64: 1, 10, 10, 128>}, {pipeline_mode = #tpu.pipeline_mode<synchronous>, transform_indices = @transform_1, window_bounds = array<i64: 9, 128, 128>}, {transform_indices = @transform_2, window_bounds = array<i64: 32, 128>}, {transform_indices = @transform_3, window_bounds = array<i64: 1, 1, 128>}, {transform_indices = @transform_4, window_bounds = array<i64: 1, 1, 128>}]} {
    %c4_i32 = arith.constant 4 : i32
    %0 = arith.muli %arg1, %c4_i32 : i32
    %cst = arith.constant 0.000000e+00 : f32
    %1 = vector.broadcast %cst : f32 to vector<32x128xf32>
    %c0 = arith.constant 0 : index
    %c0_0 = arith.constant 0 : index
    %2 = vector.load %arg7[%c0, %c0_0] : memref<32x128xf32, #tpu.memory_space<vmem>>, vector<32x128xf32>
    tpu.vector_store %arg7[%c0, %c0_0], %1 {strides = array<i32>} : memref<32x128xf32, #tpu.memory_space<vmem>>, vector<32x128xf32>,
    %c0_i32 = arith.constant 0 : i32
    %3 = arith.addi %0, %c0_i32 : i32
    %c0_1 = arith.constant 0 : index
    %4 = arith.index_cast %3 : i32 to index
    %c0_2 = arith.constant 0 : index
    %c0_3 = arith.constant 0 : index
    %5 = vector.load %arg2[%c0_1, %4, %c0_2, %c0_3] : memref<1x10x10x128xbf16, #tpu.memory_space<vmem>>, vector<1x4x8x128xbf16>
    %6 = vector.shape_cast %5 : vector<1x4x8x128xbf16> to vector<4x8x128xbf16>
    %7 = vector.shape_cast %6 : vector<4x8x128xbf16> to vector<32x128xbf16>
    %c0_4 = arith.constant 0 : index
    %c0_5 = arith.constant 0 : index
    %8 = vector.load %arg7[%c0_4, %c0_5] : memref<32x128xf32, #tpu.memory_space<vmem>>, vector<32x128xf32>
    %c0_6 = arith.constant 0 : index
    %c0_7 = arith.constant 0 : index
    %c0_8 = arith.constant 0 : index
    %9 = vector.load %arg3[%c0_6, %c0_7, %c0_8] : memref<9x128x128xbf16, #tpu.memory_space<vmem>>, vector<1x128x128xbf16>
    %10 = vector.shape_cast %9 : vector<1x128x128xbf16> to vector<128x128xbf16>
    %cst_9 = arith.constant dense<0.000000e+00> : vector<32x128xf32>
    %11 = tpu.matmul %7, %10, %cst_9 {dimension_numbers = #tpu.dot_dimension_numbers<[1], [0], [0], [1], [0, 0, 1, 1], [], []>} : vector<32x128xbf16>, vector<128x128xbf16>, vector<32x128xf32> -> vector<32x128xf32>
    %12 = arith.addf %8, %11 : vector<32x128xf32>
    %c0_10 = arith.constant 0 : index
    %c0_11 = arith.constant 0 : index
    %13 = vector.load %arg7[%c0_10, %c0_11] : memref<32x128xf32, #tpu.memory_space<vmem>>, vector<32x128xf32>
    tpu.vector_store %arg7[%c0_10, %c0_11], %12 {strides = array<i32>} : memref<32x128xf32, #tpu.memory_space<vmem>>, vector<32x128xf32>,
    %c0_i32_12 = arith.constant 0 : i32
    %14 = arith.addi %0, %c0_i32_12 : i32
    %c0_13 = arith.constant 0 : index
    %15 = arith.index_cast %14 : i32 to index
    %c1 = arith.constant 1 : index
    %c0_14 = arith.constant 0 : index
    %16 = vector.load %arg2[%c0_13, %15, %c1, %c0_14] : memref<1x10x10x128xbf16, #tpu.memory_space<vmem>>, vector<1x4x8x128xbf16>
    %17 = vector.shape_cast %16 : vector<1x4x8x128xbf16> to vector<4x8x128xbf16>
    %18 = vector.shape_cast %17 : vector<4x8x128xbf16> to vector<32x128xbf16>
    %c0_15 = arith.constant 0 : index
    %c0_16 = arith.constant 0 : index
    %19 = vector.load %arg7[%c0_15, %c0_16] : memref<32x128xf32, #tpu.memory_space<vmem>>, vector<32x128xf32>
    %c1_17 = arith.constant 1 : index
    %c0_18 = arith.constant 0 : index
    %c0_19 = arith.constant 0 : index
    %20 = vector.load %arg3[%c1_17, %c0_18, %c0_19] : memref<9x128x128xbf16, #tpu.memory_space<vmem>>, vector<1x128x128xbf16>
    %21 = vector.shape_cast %20 : vector<1x128x128xbf16> to vector<128x128xbf16>
    %cst_20 = arith.constant dense<0.000000e+00> : vector<32x128xf32>
    %22 = tpu.matmul %18, %21, %cst_20 {dimension_numbers = #tpu.dot_dimension_numbers<[1], [0], [0], [1], [0, 0, 1, 1], [], []>} : vector<32x128xbf16>, vector<128x128xbf16>, vector<32x128xf32> -> vector<32x128xf32>
    %23 = arith.addf %19, %22 : vector<32x128xf32>
    %c0_21 = arith.constant 0 : index
    %c0_22 = arith.constant 0 : index
    %24 = vector.load %arg7[%c0_21, %c0_22] : memref<32x128xf32, #tpu.memory_space<vmem>>, vector<32x128xf32>
    tpu.vector_store %arg7[%c0_21, %c0_22], %23 {strides = array<i32>} : memref<32x128xf32, #tpu.memory_space<vmem>>, vector<32x128xf32>,
    %c0_i32_23 = arith.constant 0 : i32
    %25 = arith.addi %0, %c0_i32_23 : i32
    %c0_24 = arith.constant 0 : index
    %26 = arith.index_cast %25 : i32 to index
    %c2 = arith.constant 2 : index
    %c0_25 = arith.constant 0 : index
    %27 = vector.load %arg2[%c0_24, %26, %c2, %c0_25] : memref<1x10x10x128xbf16, #tpu.memory_space<vmem>>, vector<1x4x8x128xbf16>
    %28 = vector.shape_cast %27 : vector<1x4x8x128xbf16> to vector<4x8x128xbf16>
    %29 = vector.shape_cast %28 : vector<4x8x128xbf16> to vector<32x128xbf16>
    %c0_26 = arith.constant 0 : index
    %c0_27 = arith.constant 0 : index
    %30 = vector.load %arg7[%c0_26, %c0_27] : memref<32x128xf32, #tpu.memory_space<vmem>>, vector<32x128xf32>
    %c2_28 = arith.constant 2 : index
    %c0_29 = arith.constant 0 : index
    %c0_30 = arith.constant 0 : index
    %31 = vector.load %arg3[%c2_28, %c0_29, %c0_30] : memref<9x128x128xbf16, #tpu.memory_space<vmem>>, vector<1x128x128xbf16>
    %32 = vector.shape_cast %31 : vector<1x128x128xbf16> to vector<128x128xbf16>
    %cst_31 = arith.constant dense<0.000000e+00> : vector<32x128xf32>
    %33 = tpu.matmul %29, %32, %cst_31 {dimension_numbers = #tpu.dot_dimension_numbers<[1], [0], [0], [1], [0, 0, 1, 1], [], []>} : vector<32x128xbf16>, vector<128x128xbf16>, vector<32x128xf32> -> vector<32x128xf32>
    %34 = arith.addf %30, %33 : vector<32x128xf32>
    %c0_32 = arith.constant 0 : index
    %c0_33 = arith.constant 0 : index
    %35 = vector.load %arg7[%c0_32, %c0_33] : memref<32x128xf32, #tpu.memory_space<vmem>>, vector<32x128xf32>
    tpu.vector_store %arg7[%c0_32, %c0_33], %34 {strides = array<i32>} : memref<32x128xf32, #tpu.memory_space<vmem>>, vector<32x128xf32>,
    %c1_i32 = arith.constant 1 : i32
    %36 = arith.addi %0, %c1_i32 : i32
    %c0_34 = arith.constant 0 : index
    %37 = arith.index_cast %36 : i32 to index
    %c0_35 = arith.constant 0 : index
    %c0_36 = arith.constant 0 : index
    %38 = vector.load %arg2[%c0_34, %37, %c0_35, %c0_36] : memref<1x10x10x128xbf16, #tpu.memory_space<vmem>>, vector<1x4x8x128xbf16>
    %39 = vector.shape_cast %38 : vector<1x4x8x128xbf16> to vector<4x8x128xbf16>
    %40 = vector.shape_cast %39 : vector<4x8x128xbf16> to vector<32x128xbf16>
    %c0_37 = arith.constant 0 : index
    %c0_38 = arith.constant 0 : index
    %41 = vector.load %arg7[%c0_37, %c0_38] : memref<32x128xf32, #tpu.memory_space<vmem>>, vector<32x128xf32>
    %c3 = arith.constant 3 : index
    %c0_39 = arith.constant 0 : index
    %c0_40 = arith.constant 0 : index
    %42 = vector.load %arg3[%c3, %c0_39, %c0_40] : memref<9x128x128xbf16, #tpu.memory_space<vmem>>, vector<1x128x128xbf16>
    %43 = vector.shape_cast %42 : vector<1x128x128xbf16> to vector<128x128xbf16>
    %cst_41 = arith.constant dense<0.000000e+00> : vector<32x128xf32>
    %44 = tpu.matmul %40, %43, %cst_41 {dimension_numbers = #tpu.dot_dimension_numbers<[1], [0], [0], [1], [0, 0, 1, 1], [], []>} : vector<32x128xbf16>, vector<128x128xbf16>, vector<32x128xf32> -> vector<32x128xf32>
    %45 = arith.addf %41, %44 : vector<32x128xf32>
    %c0_42 = arith.constant 0 : index
    %c0_43 = arith.constant 0 : index
    %46 = vector.load %arg7[%c0_42, %c0_43] : memref<32x128xf32, #tpu.memory_space<vmem>>, vector<32x128xf32>
    tpu.vector_store %arg7[%c0_42, %c0_43], %45 {strides = array<i32>} : memref<32x128xf32, #tpu.memory_space<vmem>>, vector<32x128xf32>,
    %c1_i32_44 = arith.constant 1 : i32
    %47 = arith.addi %0, %c1_i32_44 : i32
    %c0_45 = arith.constant 0 : index
    %48 = arith.index_cast %47 : i32 to index
    %c1_46 = arith.constant 1 : index
    %c0_47 = arith.constant 0 : index
    %49 = vector.load %arg2[%c0_45, %48, %c1_46, %c0_47] : memref<1x10x10x128xbf16, #tpu.memory_space<vmem>>, vector<1x4x8x128xbf16>
    %50 = vector.shape_cast %49 : vector<1x4x8x128xbf16> to vector<4x8x128xbf16>
    %51 = vector.shape_cast %50 : vector<4x8x128xbf16> to vector<32x128xbf16>
    %c0_48 = arith.constant 0 : index
    %c0_49 = arith.constant 0 : index
    %52 = vector.load %arg7[%c0_48, %c0_49] : memref<32x128xf32, #tpu.memory_space<vmem>>, vector<32x128xf32>
    %c4 = arith.constant 4 : index
    %c0_50 = arith.constant 0 : index
    %c0_51 = arith.constant 0 : index
    %53 = vector.load %arg3[%c4, %c0_50, %c0_51] : memref<9x128x128xbf16, #tpu.memory_space<vmem>>, vector<1x128x128xbf16>
    %54 = vector.shape_cast %53 : vector<1x128x128xbf16> to vector<128x128xbf16>
    %cst_52 = arith.constant dense<0.000000e+00> : vector<32x128xf32>
    %55 = tpu.matmul %51, %54, %cst_52 {dimension_numbers = #tpu.dot_dimension_numbers<[1], [0], [0], [1], [0, 0, 1, 1], [], []>} : vector<32x128xbf16>, vector<128x128xbf16>, vector<32x128xf32> -> vector<32x128xf32>
    %56 = arith.addf %52, %55 : vector<32x128xf32>
    %c0_53 = arith.constant 0 : index
    %c0_54 = arith.constant 0 : index
    %57 = vector.load %arg7[%c0_53, %c0_54] : memref<32x128xf32, #tpu.memory_space<vmem>>, vector<32x128xf32>
    tpu.vector_store %arg7[%c0_53, %c0_54], %56 {strides = array<i32>} : memref<32x128xf32, #tpu.memory_space<vmem>>, vector<32x128xf32>,
    %c1_i32_55 = arith.constant 1 : i32
    %58 = arith.addi %0, %c1_i32_55 : i32
    %c0_56 = arith.constant 0 : index
    %59 = arith.index_cast %58 : i32 to index
    %c2_57 = arith.constant 2 : index
    %c0_58 = arith.constant 0 : index
    %60 = vector.load %arg2[%c0_56, %59, %c2_57, %c0_58] : memref<1x10x10x128xbf16, #tpu.memory_space<vmem>>, vector<1x4x8x128xbf16>
    %61 = vector.shape_cast %60 : vector<1x4x8x128xbf16> to vector<4x8x128xbf16>
    %62 = vector.shape_cast %61 : vector<4x8x128xbf16> to vector<32x128xbf16>
    %c0_59 = arith.constant 0 : index
    %c0_60 = arith.constant 0 : index
    %63 = vector.load %arg7[%c0_59, %c0_60] : memref<32x128xf32, #tpu.memory_space<vmem>>, vector<32x128xf32>
    %c5 = arith.constant 5 : index
    %c0_61 = arith.constant 0 : index
    %c0_62 = arith.constant 0 : index
    %64 = vector.load %arg3[%c5, %c0_61, %c0_62] : memref<9x128x128xbf16, #tpu.memory_space<vmem>>, vector<1x128x128xbf16>
    %65 = vector.shape_cast %64 : vector<1x128x128xbf16> to vector<128x128xbf16>
    %cst_63 = arith.constant dense<0.000000e+00> : vector<32x128xf32>
    %66 = tpu.matmul %62, %65, %cst_63 {dimension_numbers = #tpu.dot_dimension_numbers<[1], [0], [0], [1], [0, 0, 1, 1], [], []>} : vector<32x128xbf16>, vector<128x128xbf16>, vector<32x128xf32> -> vector<32x128xf32>
    %67 = arith.addf %63, %66 : vector<32x128xf32>
    %c0_64 = arith.constant 0 : index
    %c0_65 = arith.constant 0 : index
    %68 = vector.load %arg7[%c0_64, %c0_65] : memref<32x128xf32, #tpu.memory_space<vmem>>, vector<32x128xf32>
    tpu.vector_store %arg7[%c0_64, %c0_65], %67 {strides = array<i32>} : memref<32x128xf32, #tpu.memory_space<vmem>>, vector<32x128xf32>,
    %c2_i32 = arith.constant 2 : i32
    %69 = arith.addi %0, %c2_i32 : i32
    %c0_66 = arith.constant 0 : index
    %70 = arith.index_cast %69 : i32 to index
    %c0_67 = arith.constant 0 : index
    %c0_68 = arith.constant 0 : index
    %71 = vector.load %arg2[%c0_66, %70, %c0_67, %c0_68] : memref<1x10x10x128xbf16, #tpu.memory_space<vmem>>, vector<1x4x8x128xbf16>
    %72 = vector.shape_cast %71 : vector<1x4x8x128xbf16> to vector<4x8x128xbf16>
    %73 = vector.shape_cast %72 : vector<4x8x128xbf16> to vector<32x128xbf16>
    %c0_69 = arith.constant 0 : index
    %c0_70 = arith.constant 0 : index
    %74 = vector.load %arg7[%c0_69, %c0_70] : memref<32x128xf32, #tpu.memory_space<vmem>>, vector<32x128xf32>
    %c6 = arith.constant 6 : index
    %c0_71 = arith.constant 0 : index
    %c0_72 = arith.constant 0 : index
    %75 = vector.load %arg3[%c6, %c0_71, %c0_72] : memref<9x128x128xbf16, #tpu.memory_space<vmem>>, vector<1x128x128xbf16>
    %76 = vector.shape_cast %75 : vector<1x128x128xbf16> to vector<128x128xbf16>
    %cst_73 = arith.constant dense<0.000000e+00> : vector<32x128xf32>
    %77 = tpu.matmul %73, %76, %cst_73 {dimension_numbers = #tpu.dot_dimension_numbers<[1], [0], [0], [1], [0, 0, 1, 1], [], []>} : vector<32x128xbf16>, vector<128x128xbf16>, vector<32x128xf32> -> vector<32x128xf32>
    %78 = arith.addf %74, %77 : vector<32x128xf32>
    %c0_74 = arith.constant 0 : index
    %c0_75 = arith.constant 0 : index
    %79 = vector.load %arg7[%c0_74, %c0_75] : memref<32x128xf32, #tpu.memory_space<vmem>>, vector<32x128xf32>
    tpu.vector_store %arg7[%c0_74, %c0_75], %78 {strides = array<i32>} : memref<32x128xf32, #tpu.memory_space<vmem>>, vector<32x128xf32>,
    %c2_i32_76 = arith.constant 2 : i32
    %80 = arith.addi %0, %c2_i32_76 : i32
    %c0_77 = arith.constant 0 : index
    %81 = arith.index_cast %80 : i32 to index
    %c1_78 = arith.constant 1 : index
    %c0_79 = arith.constant 0 : index
    %82 = vector.load %arg2[%c0_77, %81, %c1_78, %c0_79] : memref<1x10x10x128xbf16, #tpu.memory_space<vmem>>, vector<1x4x8x128xbf16>
    %83 = vector.shape_cast %82 : vector<1x4x8x128xbf16> to vector<4x8x128xbf16>
    %84 = vector.shape_cast %83 : vector<4x8x128xbf16> to vector<32x128xbf16>
    %c0_80 = arith.constant 0 : index
    %c0_81 = arith.constant 0 : index
    %85 = vector.load %arg7[%c0_80, %c0_81] : memref<32x128xf32, #tpu.memory_space<vmem>>, vector<32x128xf32>
    %c7 = arith.constant 7 : index
    %c0_82 = arith.constant 0 : index
    %c0_83 = arith.constant 0 : index
    %86 = vector.load %arg3[%c7, %c0_82, %c0_83] : memref<9x128x128xbf16, #tpu.memory_space<vmem>>, vector<1x128x128xbf16>
    %87 = vector.shape_cast %86 : vector<1x128x128xbf16> to vector<128x128xbf16>
    %cst_84 = arith.constant dense<0.000000e+00> : vector<32x128xf32>
    %88 = tpu.matmul %84, %87, %cst_84 {dimension_numbers = #tpu.dot_dimension_numbers<[1], [0], [0], [1], [0, 0, 1, 1], [], []>} : vector<32x128xbf16>, vector<128x128xbf16>, vector<32x128xf32> -> vector<32x128xf32>
    %89 = arith.addf %85, %88 : vector<32x128xf32>
    %c0_85 = arith.constant 0 : index
    %c0_86 = arith.constant 0 : index
    %90 = vector.load %arg7[%c0_85, %c0_86] : memref<32x128xf32, #tpu.memory_space<vmem>>, vector<32x128xf32>
    tpu.vector_store %arg7[%c0_85, %c0_86], %89 {strides = array<i32>} : memref<32x128xf32, #tpu.memory_space<vmem>>, vector<32x128xf32>,
    %c2_i32_87 = arith.constant 2 : i32
    %91 = arith.addi %0, %c2_i32_87 : i32
    %c0_88 = arith.constant 0 : index
    %92 = arith.index_cast %91 : i32 to index
    %c2_89 = arith.constant 2 : index
    %c0_90 = arith.constant 0 : index
    %93 = vector.load %arg2[%c0_88, %92, %c2_89, %c0_90] : memref<1x10x10x128xbf16, #tpu.memory_space<vmem>>, vector<1x4x8x128xbf16>
    %94 = vector.shape_cast %93 : vector<1x4x8x128xbf16> to vector<4x8x128xbf16>
    %95 = vector.shape_cast %94 : vector<4x8x128xbf16> to vector<32x128xbf16>
    %c0_91 = arith.constant 0 : index
    %c0_92 = arith.constant 0 : index
    %96 = vector.load %arg7[%c0_91, %c0_92] : memref<32x128xf32, #tpu.memory_space<vmem>>, vector<32x128xf32>
    %c8 = arith.constant 8 : index
    %c0_93 = arith.constant 0 : index
    %c0_94 = arith.constant 0 : index
    %97 = vector.load %arg3[%c8, %c0_93, %c0_94] : memref<9x128x128xbf16, #tpu.memory_space<vmem>>, vector<1x128x128xbf16>
    %98 = vector.shape_cast %97 : vector<1x128x128xbf16> to vector<128x128xbf16>
    %cst_95 = arith.constant dense<0.000000e+00> : vector<32x128xf32>
    %99 = tpu.matmul %95, %98, %cst_95 {dimension_numbers = #tpu.dot_dimension_numbers<[1], [0], [0], [1], [0, 0, 1, 1], [], []>} : vector<32x128xbf16>, vector<128x128xbf16>, vector<32x128xf32> -> vector<32x128xf32>
    %100 = arith.addf %96, %99 : vector<32x128xf32>
    %c0_96 = arith.constant 0 : index
    %c0_97 = arith.constant 0 : index
    %101 = vector.load %arg7[%c0_96, %c0_97] : memref<32x128xf32, #tpu.memory_space<vmem>>, vector<32x128xf32>
    tpu.vector_store %arg7[%c0_96, %c0_97], %100 {strides = array<i32>} : memref<32x128xf32, #tpu.memory_space<vmem>>, vector<32x128xf32>,
    %c0_98 = arith.constant 0 : index
    %c0_99 = arith.constant 0 : index
    %102 = vector.load %arg7[%c0_98, %c0_99] : memref<32x128xf32, #tpu.memory_space<vmem>>, vector<32x128xf32>
    %103 = arith.truncf %102 : vector<32x128xf32> to vector<32x128xbf16>
    %c0_100 = arith.constant 0 : index
    %c0_101 = arith.constant 0 : index
    %104 = vector.load %arg4[%c0_100, %c0_101] : memref<32x128xbf16, #tpu.memory_space<vmem>>, vector<32x128xbf16>
    tpu.vector_store %arg4[%c0_100, %c0_101], %103 {strides = array<i32>} : memref<32x128xbf16, #tpu.memory_space<vmem>>, vector<32x128xbf16>,
    %cst_102 = arith.constant dense<0.000000e+00> : vector<128xf32>
    %105 = vector.multi_reduction <add>, %102, %cst_102 [0] : vector<32x128xf32> to vector<128xf32>
    %106 = vector.shape_cast %105 : vector<128xf32> to vector<1x128xf32>
    %107 = vector.shape_cast %106 : vector<1x128xf32> to vector<1x1x128xf32>
    %c0_103 = arith.constant 0 : index
    %c0_104 = arith.constant 0 : index
    %c0_105 = arith.constant 0 : index
    %108 = vector.load %arg5[%c0_103, %c0_104, %c0_105] : memref<1x1x128xf32, #tpu.memory_space<vmem>>, vector<1x1x128xf32>
    tpu.vector_store %arg5[%c0_103, %c0_104, %c0_105], %107 {strides = array<i32>} : memref<1x1x128xf32, #tpu.memory_space<vmem>>, vector<1x1x128xf32>,
    %109 = arith.mulf %102, %102 : vector<32x128xf32>
    %cst_106 = arith.constant dense<0.000000e+00> : vector<128xf32>
    %110 = vector.multi_reduction <add>, %109, %cst_106 [0] : vector<32x128xf32> to vector<128xf32>
    %111 = vector.shape_cast %110 : vector<128xf32> to vector<1x128xf32>
    %112 = vector.shape_cast %111 : vector<1x128xf32> to vector<1x1x128xf32>
    %c0_107 = arith.constant 0 : index
    %c0_108 = arith.constant 0 : index
    %c0_109 = arith.constant 0 : index
    %113 = vector.load %arg6[%c0_107, %c0_108, %c0_109] : memref<1x1x128xf32, #tpu.memory_space<vmem>>, vector<1x1x128xf32>
    tpu.vector_store %arg6[%c0_107, %c0_108, %c0_109], %112 {strides = array<i32>} : memref<1x1x128xf32, #tpu.memory_space<vmem>>, vector<1x1x128xf32>,
    return
  }
  func.func @transform_0(%arg0: i32, %arg1: i32) -> (i32, i32, i32, i32) {
    %c0_i32 = arith.constant 0 : i32
    %c0_i32_0 = arith.constant 0 : i32
    %c0_i32_1 = arith.constant 0 : i32
    %c0_i32_2 = arith.constant 0 : i32
    return %arg0, %c0_i32, %c0_i32_0, %c0_i32_1 : i32, i32, i32, i32
  }
  func.func @transform_1(%arg0: i32, %arg1: i32) -> (i32, i32, i32) {
    %c0_i32 = arith.constant 0 : i32
    %c0_i32_0 = arith.constant 0 : i32
    %c0_i32_1 = arith.constant 0 : i32
    %c0_i32_2 = arith.constant 0 : i32
    return %c0_i32, %c0_i32_0, %c0_i32_1 : i32, i32, i32
  }
  func.func @transform_2(%arg0: i32, %arg1: i32) -> (i32, i32) {
    %c2_i32 = arith.constant 2 : i32
    %0 = arith.muli %arg0, %c2_i32 : i32
    %1 = arith.addi %0, %arg1 : i32
    %c0_i32 = arith.constant 0 : i32
    %c0_i32_0 = arith.constant 0 : i32
    return %1, %c0_i32 : i32, i32
  }
  func.func @transform_3(%arg0: i32, %arg1: i32) -> (i32, i32, i32) {
    %c2_i32 = arith.constant 2 : i32
    %0 = arith.muli %arg0, %c2_i32 : i32
    %1 = arith.addi %0, %arg1 : i32
    %c0_i32 = arith.constant 0 : i32
    %c0_i32_0 = arith.constant 0 : i32
    %c0_i32_1 = arith.constant 0 : i32
    return %1, %c0_i32, %c0_i32_0 : i32, i32, i32
  }
  func.func @transform_4(%arg0: i32, %arg1: i32) -> (i32, i32, i32) {
    %c2_i32 = arith.constant 2 : i32
    %0 = arith.muli %arg0, %c2_i32 : i32
    %1 = arith.addi %0, %arg1 : i32
    %c0_i32 = arith.constant 0 : i32
    %c0_i32_0 = arith.constant 0 : i32
    %c0_i32_1 = arith.constant 0 : i32
    return %1, %c0_i32, %c0_i32_0 : i32, i32, i32
  }
}

module attributes {stable_mosaic.version = 11 : i64} {
  func.func @_bn_add_1x1_relu_kernel(%arg0: i32, %arg1: memref<32x128xbf16, #tpu.memory_space<vmem>>, %arg2: memref<1x128xf32, #tpu.memory_space<vmem>>, %arg3: memref<1x128xf32, #tpu.memory_space<vmem>>, %arg4: memref<32x128xbf16, #tpu.memory_space<vmem>>, %arg5: memref<128x128xbf16, #tpu.memory_space<vmem>>, %arg6: memref<1x128xf32, #tpu.memory_space<vmem>>, %arg7: memref<32x128xf32, #tpu.memory_space<vmem>>) attributes {dimension_semantics = [#tpu.dimension_semantics<parallel>], iteration_bounds = array<i64: 4>, scalar_prefetch = 0 : i64, scratch_operands = 0 : i64, tpu.core_type = #tpu.core_type<tc>, window_params = [{transform_indices = @transform_0, window_bounds = array<i64: 32, 128>}, {pipeline_mode = #tpu.pipeline_mode<synchronous>, transform_indices = @transform_1, window_bounds = array<i64: 1, 128>}, {pipeline_mode = #tpu.pipeline_mode<synchronous>, transform_indices = @transform_2, window_bounds = array<i64: 1, 128>}, {transform_indices = @transform_3, window_bounds = array<i64: 32, 128>}, {pipeline_mode = #tpu.pipeline_mode<synchronous>, transform_indices = @transform_4, window_bounds = array<i64: 128, 128>}, {pipeline_mode = #tpu.pipeline_mode<synchronous>, transform_indices = @transform_5, window_bounds = array<i64: 1, 128>}, {transform_indices = @transform_6, window_bounds = array<i64: 32, 128>}]} {
    %c0 = arith.constant 0 : index
    %c0_0 = arith.constant 0 : index
    %0 = vector.load %arg4[%c0, %c0_0] : memref<32x128xbf16, #tpu.memory_space<vmem>>, vector<32x128xbf16>
    %c0_1 = arith.constant 0 : index
    %c0_2 = arith.constant 0 : index
    %1 = vector.load %arg5[%c0_1, %c0_2] : memref<128x128xbf16, #tpu.memory_space<vmem>>, vector<128x128xbf16>
    %cst = arith.constant dense<0.000000e+00> : vector<32x128xf32>
    %2 = tpu.matmul %0, %1, %cst {dimension_numbers = #tpu.dot_dimension_numbers<[1], [0], [0], [1], [0, 0, 1, 1], [], []>} : vector<32x128xbf16>, vector<128x128xbf16>, vector<32x128xf32> -> vector<32x128xf32>
    %c0_3 = arith.constant 0 : index
    %c0_4 = arith.constant 0 : index
    %3 = vector.load %arg6[%c0_3, %c0_4] : memref<1x128xf32, #tpu.memory_space<vmem>>, vector<1x128xf32>
    %4 = vector.broadcast %3 : vector<1x128xf32> to vector<32x128xf32>
    %5 = arith.addf %2, %4 : vector<32x128xf32>
    %c0_5 = arith.constant 0 : index
    %c0_6 = arith.constant 0 : index
    %6 = vector.load %arg1[%c0_5, %c0_6] : memref<32x128xbf16, #tpu.memory_space<vmem>>, vector<32x128xbf16>
    %7 = arith.extf %6 : vector<32x128xbf16> to vector<32x128xf32>
    %c0_7 = arith.constant 0 : index
    %c0_8 = arith.constant 0 : index
    %8 = vector.load %arg2[%c0_7, %c0_8] : memref<1x128xf32, #tpu.memory_space<vmem>>, vector<1x128xf32>
    %9 = vector.broadcast %8 : vector<1x128xf32> to vector<32x128xf32>
    %10 = arith.mulf %7, %9 : vector<32x128xf32>
    %c0_9 = arith.constant 0 : index
    %c0_10 = arith.constant 0 : index
    %11 = vector.load %arg3[%c0_9, %c0_10] : memref<1x128xf32, #tpu.memory_space<vmem>>, vector<1x128xf32>
    %12 = vector.broadcast %11 : vector<1x128xf32> to vector<32x128xf32>
    %13 = arith.addf %10, %12 : vector<32x128xf32>
    %14 = arith.addf %13, %5 : vector<32x128xf32>
    %cst_11 = arith.constant 0.000000e+00 : f32
    %15 = vector.broadcast %cst_11 : f32 to vector<32x128xf32>
    %16 = arith.maximumf %14, %15 : vector<32x128xf32>
    %c0_12 = arith.constant 0 : index
    %c0_13 = arith.constant 0 : index
    %17 = vector.load %arg7[%c0_12, %c0_13] : memref<32x128xf32, #tpu.memory_space<vmem>>, vector<32x128xf32>
    tpu.vector_store %arg7[%c0_12, %c0_13], %16 {strides = array<i32>} : memref<32x128xf32, #tpu.memory_space<vmem>>, vector<32x128xf32>,
    return
  }
  func.func @transform_0(%arg0: i32) -> (i32, i32) {
    %c0_i32 = arith.constant 0 : i32
    %c0_i32_0 = arith.constant 0 : i32
    return %arg0, %c0_i32 : i32, i32
  }
  func.func @transform_1(%arg0: i32) -> (i32, i32) {
    %c0_i32 = arith.constant 0 : i32
    %c0_i32_0 = arith.constant 0 : i32
    %c0_i32_1 = arith.constant 0 : i32
    return %c0_i32, %c0_i32_0 : i32, i32
  }
  func.func @transform_2(%arg0: i32) -> (i32, i32) {
    %c0_i32 = arith.constant 0 : i32
    %c0_i32_0 = arith.constant 0 : i32
    %c0_i32_1 = arith.constant 0 : i32
    return %c0_i32, %c0_i32_0 : i32, i32
  }
  func.func @transform_3(%arg0: i32) -> (i32, i32) {
    %c0_i32 = arith.constant 0 : i32
    %c0_i32_0 = arith.constant 0 : i32
    return %arg0, %c0_i32 : i32, i32
  }
  func.func @transform_4(%arg0: i32) -> (i32, i32) {
    %c0_i32 = arith.constant 0 : i32
    %c0_i32_0 = arith.constant 0 : i32
    %c0_i32_1 = arith.constant 0 : i32
    return %c0_i32, %c0_i32_0 : i32, i32
  }
  func.func @transform_5(%arg0: i32) -> (i32, i32) {
    %c0_i32 = arith.constant 0 : i32
    %c0_i32_0 = arith.constant 0 : i32
    %c0_i32_1 = arith.constant 0 : i32
    return %c0_i32, %c0_i32_0 : i32, i32
  }
  func.func @transform_6(%arg0: i32) -> (i32, i32) {
    %c0_i32 = arith.constant 0 : i32
    %c0_i32_0 = arith.constant 0 : i32
    return %arg0, %c0_i32 : i32, i32
  }
}

</mosaic_0001>

<bundles_post_ra>
// kernel: basicblock_forward.5
= control target key start
LH: loop header
LB: loop body
LE: loop exit
PB: predicated region body
PF: predicated region fallthrough
CT: control target
= control target key end

     0   :  { %s361_s12 = smov 0   ;;  %s384_s0 = inlined_call_operand.vmem [shape: bf16[128,128], index: 0, kind: input, shape index: {}]   ;;  %s385_s1 = inlined_call_operand.vmem [shape: f32[1,128], index: 1, kind: input, shape index: {}]   ;;  %s386_s2 = inlined_call_operand.vmem [shape: f32[1,128], index: 2, kind: input, shape index: {}]   ;;  %s387_s3 = inlined_call_operand.vmem [shape: bf16[128,128], index: 3, kind: output, shape index: {}]  }
   0x1 LB: > { %s284_s13 = sadd.s32 4294967295, %s339_s12   ;;  %p288_p0 = scmp.ge.s32.totalorder %s339_s12, 1  ;;  %s339_s12 = sphi %s361_s12, %s13_s12  }
   0x2   : > { %p138_p1 = scmp.lt.s32.totalorder %s339_s12, 5 }
   0x4   : > { %p139_p2 = pnand %p288_p0, %p138_p1 }
   0x5   : > { %s289_s14 = sshll.u32 (!%p139_p2), %s284_s13, 2  ;;  %v293_v2 = vld [vmem:[%s385_s1] ss:$0 sm:$0xff] (!%p139_p2) }
   0x6   : > { %142 = sbr.rel (%p139_p2) target bundleno = 28 (0x1c), region = 32  ;;  %p163_p3 = scmp.lt.s32.totalorder (!%p139_p2), %s289_s14, 15  ;;  %v294_v7 = vld [vmem:[%s386_s2] ss:$0 sm:$0xff] (!%p139_p2) }
   0xd   : > { %s389_s14 = smov (!%p163_p3, %s289_s14), 15 }
   0xe   : > { %s290_s15 = sshll.u32 %s389_s14, 2 }
   0xf   : > { %s166_s18 = scalar_lea.vmem %s384_s0, %s290_s15  ;;  %s172_s25 = scalar_lea.vmem %s387_s3, %s290_s15 }
  0x10   : > { %v306_v0 = vld [vmem:[%s166_s18] sm:$0xff]   ;;  %v323_v1 = vld [vmem:[%s166_s18 + $0x8] sm:$0xff]  }
  0x11   : > { %v307_v3 = vunpack.c.l.bf16 %v306_v0  ;;  %v308_v4 = vunpack.c.h.bf16 %v306_v0  ;;  %v311_v5 = vunpack.c.l.bf16 %v323_v1  ;;  %v312_v6 = vunpack.c.h.bf16 %v323_v1 }
  0x13   : > { %v189_v8 = vmul.f32 %v307_v3, %v293_v2  ;;  %v190_v9 = vmul.f32 %v308_v4, %v293_v2  ;;  %v191_v10 = vmul.f32 %v311_v5, %v293_v2  ;;  %v192_v11 = vmul.f32 %v312_v6, %v293_v2 }
  0x15   : > { %v200_v12 = vadd.f32 %v294_v7, %v189_v8  ;;  %v201_v13 = vadd.f32 %v294_v7, %v190_v9  ;;  %v202_v14 = vadd.f32 %v294_v7, %v191_v10  ;;  %v203_v15 = vadd.f32 %v294_v7, %v192_v11 }
  0x17   : > { %v204_v16 = vmax.f32 %v200_v12, 0.0  ;;  %v205_v17 = vmax.f32 %v201_v13, 0.0  ;;  %v206_v18 = vmax.f32 %v202_v14, 0.0  ;;  %v207_v19 = vmax.f32 %v203_v15, 0.0 }
  0x19   : > { %v316_v20 = vpack.c.bf16 %v205_v17, %v204_v16  ;;  %v321_v21 = vpack.c.bf16 %v207_v19, %v206_v18 }
  0x1b   : > { %317 = vst [vmem:[%s172_s25] sm:$0xff] %v316_v20   ;;  %324 = vst [vmem:[%s172_s25 + $0x8] sm:$0xff] %v321_v21  }
  0x1c PF: > { %s13_s12 = sadd.s32 1, %s339_s12  }
  0x1d   : > { %p10_p4 = scmp.ge.s32.totalorder %s13_s12, 6  }
  0x1f   :  { %12 = sbr.rel (!%p10_p4) target bundleno = 1 (0x1), region = 62 }

// kernel: basicblock_forward.4
= control target key start
LH: loop header
LB: loop body
LE: loop exit
PB: predicated region body
PF: predicated region fallthrough
CT: control target
= control target key end

     0   :  { %s619_s15 = smov 0   ;;  %s674_s0 = inlined_call_operand.vmem [shape: bf16[128,128], index: 0, kind: input, shape index: {}]   ;;  %s675_s1 = inlined_call_operand.vmem [shape: bf16[128,128], index: 1, kind: input, shape index: {}]   ;;  %s676_s2 = inlined_call_operand.vmem [shape: bf16[128,128], index: 2, kind: output, shape index: {0}]   ;;  %s677_s3 = inlined_call_operand.vmem [shape: f32[4,1,128], index: 3, kind: output, shape index: {1}]   ;;  %s678_s4 = inlined_call_operand.vmem [shape: f32[4,1,128], index: 4, kind: output, shape index: {2}]  }
   0x1 LB: > { %s625_s16 = sadd.s32 4294967295, %s592_s15   ;;  %p502_p0 = scmp.ge.s32.totalorder %s592_s15, 1  ;;  %s592_s15 = sphi %s619_s15, %s15_s15  }
   0x2   : > { %p168_p1 = scmp.lt.s32.totalorder %s592_s15, 5 }
   0x4   : > { %p169_p2 = pnand %p502_p0, %p168_p1 }
   0x5   : > { %v576_v0 = vld [vmem:[%s675_s1] sm:$0xff] (!%p169_p2)   ;;  %s503_s19 = sshll.u32 (!%p169_p2), %s625_s16, 2  ;;  %v577_v1 = vld [vmem:[%s675_s1 + $0x8] sm:$0xff] (!%p169_p2)   ;;  %v578_v2 = vld [vmem:[%s675_s1 + $0x10] sm:$0xff] (!%p169_p2)   ;;  %p212_p4 = scmp.lt.s32.totalorder (!%p169_p2), %s625_s16, 3 }
   0x6   : > { %172 = sbr.rel (%p169_p2) target bundleno = 274 (0x112), region = 28  ;;  %p201_p3 = scmp.lt.s32.totalorder (!%p169_p2), %s503_s19, 15  ;;  %548 = vmatprep.subr.bf16.mxu0 (!%p169_p2), %v576_v0  ;;  %v579_v3 = vld [vmem:[%s675_s1 + $0x18] sm:$0xff] (!%p169_p2)   ;;  %v580_v5 = vld [vmem:[%s675_s1 + $0x20] sm:$0xff] (!%p169_p2)   ;;  %v581_v6 = vld [vmem:[%s675_s1 + $0x28] sm:$0xff] (!%p169_p2)  }
   0x7   : > { %549 = vmatpush3.bf16.msra.mxu0 (!%p169_p2), %v576_v0  ;;  %v582_v7 = vld [vmem:[%s675_s1 + $0x30] sm:$0xff] (!%p169_p2)   ;;  %v583_v8 = vld [vmem:[%s675_s1 + $0x38] sm:$0xff] (!%p169_p2)  }
   0x8   : > { %550 = vmatprep.subr.bf16.mxu0 (!%p169_p2), %v577_v1 }
   0xb   : > { %551 = vmatpush3.bf16.msra.mxu0 (!%p169_p2), %v577_v1 }
   0xc   : > { %552 = vmatprep.subr.bf16.mxu0 (!%p169_p2), %v578_v2 }
   0xd   : > { %s680_s19 = smov (!%p201_p3, %s503_s19), 15  ;;  %s682_s16 = smov (!%p212_p4, %s625_s16), 3 }
   0xe   : > { %s504_s24 = sshll.u32 %s680_s19, 2  ;;  %s214_s19 = scalar_lea.vmem %s677_s3, %s682_s16 }
   0xf   : > { %s204_s27 = scalar_lea.vmem %s674_s0, %s504_s24  ;;  %553 = vmatpush3.bf16.msra.mxu0 %v578_v2  ;;  %s210_s14 = scalar_lea.vmem %s676_s2, %s504_s24 }
  0x10   : > { %v584_v4 = vld [vmem:[%s204_s27] sm:$0xff]   ;;  %554 = vmatprep.subr.bf16.mxu0 %v579_v3  ;;  %v585_v9 = vld [vmem:[%s204_s27 + $0x8] sm:$0xff]   ;;  %s217_s22 = scalar_lea.vmem %s678_s4, %s682_s16 }
  0x11   : > { %564 = vmatprep.mubr.bf16.mxu0 %v584_v4 }
  0x13   : > { %555 = vmatpush3.bf16.msra.mxu0 %v579_v3 }
  0x14   : > { %556 = vmatprep.subr.bf16.mxu0 %v580_v5 }
  0x17   : > { %557 = vmatpush3.bf16.msra.mxu0 %v580_v5 }
  0x18   : > { %558 = vmatprep.subr.bf16.mxu0 %v581_v6 }
  0x1b   : > { %559 = vmatpush3.bf16.msra.mxu0 %v581_v6 }
  0x1c   : > { %560 = vmatprep.subr.bf16.mxu0 %v582_v7 }
  0x1f   : > { %561 = vmatpush3.bf16.msra.mxu0 %v582_v7 }
  0x20   : > { %562 = vmatprep.subr.bf16.mxu0 %v583_v8 }
  0x23   : > { %563 = vmatpush3.bf16.msra.mxu0 %v583_v8 }
  0x26   : > { %565 = vmatmul.mubr.bf16.vlgmr.msra.gmra.mrb[0].mxu0 %v585_v9 }
  0xf9   : > { %v566_v10 = vpop.f32.mrb[0].mxu0 }
  0xfa   : > { %v333_v11 = vpop.f32.mrb[1].mxu0  ;;  %v380_v19 = vmul.f32 %v566_v10, %v566_v10 }
  0xfb   : > { %v567_v12 = vpop.f32.mrb[2].mxu0  ;;  %v378_v15 = vmul.f32 %v333_v11, %v333_v11 }
  0xfc   : > { %v535_v13 = vpack.c.bf16 %v567_v12, %v566_v10  ;;  %v336_v14 = vpop.f32.mrb[3].mxu0  ;;  %v381_v22 = vmul.f32 %v567_v12, %v567_v12 }
  0xfd   : > { %v530_v16 = vpack.c.bf16 %v336_v14, %v333_v11  ;;  %v368_v17 = vadd.f32 %v336_v14, %v333_v11  ;;  %v379_v18 = vmul.f32 %v336_v14, %v336_v14 }
  0xfe   : > { %537 = vst [vmem:[%s210_s14 + $0x8] sm:$0xff] %v535_v13  }
  0xff   : > { %531 = vst [vmem:[%s210_s14] sm:$0xff] %v530_v16   ;;  %v369_v20 = vadd.f32 %v566_v10, %v368_v17  ;;  %v382_v21 = vadd.f32 %v379_v18, %v378_v15 }
 0x101   : > { %v370_v23 = vadd.f32 %v567_v12, %v369_v20  ;;  %v383_v24 = vadd.f32 %v382_v21, %v380_v19 }
 0x103   : > { %v371_v25 = vrot.slane %v370_v23, 4  ;;  %v384_v26 = vadd.f32 %v383_v24, %v381_v22 }
 0x105   : > { %v372_v27 = vadd.f32 %v371_v25, %v370_v23  ;;  %v385_v28 = vrot.slane %v384_v26, 4 }
 0x107   : > { %v373_v29 = vrot.slane %v372_v27, 2  ;;  %v386_v30 = vadd.f32 %v385_v28, %v384_v26 }
 0x109   : > { %v374_v31 = vadd.f32 %v373_v29, %v372_v27  ;;  %v387_v32 = vrot.slane %v386_v30, 2 }
 0x10b   : > { %v375_v33 = vrot.slane %v374_v31, 1  ;;  %v388_v34 = vadd.f32 %v387_v32, %v386_v30 }
 0x10d   : > { %v376_v35 = vadd.f32 %v375_v33, %v374_v31  ;;  %v389_v36 = vrot.slane %v388_v34, 1 }
 0x10f   : > { %377 = vst [vmem:[%s214_s19] sm:$0x1] %v376_v35  ;;  %v390_v37 = vadd.f32 %v389_v36, %v388_v34 }
 0x111   : > { %391 = vst [vmem:[%s217_s22] sm:$0x1] %v390_v37 }
 0x112 PF: > { %s15_s15 = sadd.s32 1, %s592_s15  }
 0x113   : > { %p12_p5 = scmp.ge.s32.totalorder %s15_s15, 6  }
 0x115   :  { %14 = sbr.rel (!%p12_p5) target bundleno = 1 (0x1), region = 82 }

// kernel: basicblock_forward.7
= control target key start
LH: loop header
LB: loop body
LE: loop exit
PB: predicated region body
PF: predicated region fallthrough
CT: control target
= control target key end

     0   :  { %s650_s21 = smov 0   ;;  %s707_s0 = inlined_call_operand.vmem [shape: bf16[128,128], index: 0, kind: input, shape index: {}]   ;;  %s708_s1 = inlined_call_operand.vmem [shape: f32[1,128], index: 1, kind: input, shape index: {}]   ;;  %s709_s2 = inlined_call_operand.vmem [shape: f32[1,128], index: 2, kind: input, shape index: {}]   ;;  %s710_s3 = inlined_call_operand.vmem [shape: bf16[128,128], index: 3, kind: input, shape index: {}]   ;;  %s711_s4 = inlined_call_operand.vmem [shape: bf16[128,128], index: 4, kind: input, shape index: {}]   ;;  %s712_s5 = inlined_call_operand.vmem [shape: f32[1,128], index: 5, kind: input, shape index: {}]   ;;  %s713_s6 = inlined_call_operand.vmem [shape: f32[128,128], index: 6, kind: output, shape index: {}]  }
   0x1 LB: > { %s524_s22 = sadd.s32 4294967295, %s613_s21   ;;  %p528_p0 = scmp.ge.s32.totalorder %s613_s21, 1  ;;  %s613_s21 = sphi %s650_s21, %s16_s21  }
   0x2   : > { %p224_p1 = scmp.lt.s32.totalorder %s613_s21, 5 }
   0x4   : > { %p225_p2 = pnand %p528_p0, %p224_p1 }
   0x5   : > { %v597_v0 = vld [vmem:[%s711_s4] sm:$0xff] (!%p225_p2)   ;;  %s529_s25 = sshll.u32 (!%p225_p2), %s524_s22, 2  ;;  %v598_v1 = vld [vmem:[%s711_s4 + $0x8] sm:$0xff] (!%p225_p2)   ;;  %v599_v2 = vld [vmem:[%s711_s4 + $0x10] sm:$0xff] (!%p225_p2)  }
   0x6   : > { %228 = sbr.rel (%p225_p2) target bundleno = 260 (0x104), region = 44  ;;  %p260_p3 = scmp.lt.s32.totalorder (!%p225_p2), %s529_s25, 15  ;;  %569 = vmatprep.subr.bf16.mxu0 (!%p225_p2), %v597_v0  ;;  %v600_v3 = vld [vmem:[%s711_s4 + $0x18] sm:$0xff] (!%p225_p2)   ;;  %v601_v5 = vld [vmem:[%s711_s4 + $0x20] sm:$0xff] (!%p225_p2)   ;;  %v602_v6 = vld [vmem:[%s711_s4 + $0x28] sm:$0xff] (!%p225_p2)  }
   0x7   : > { %570 = vmatpush3.bf16.msra.mxu0 (!%p225_p2), %v597_v0  ;;  %v603_v7 = vld [vmem:[%s711_s4 + $0x30] sm:$0xff] (!%p225_p2)   ;;  %v604_v8 = vld [vmem:[%s711_s4 + $0x38] sm:$0xff] (!%p225_p2)   ;;  %v546_v13 = vld [vmem:[%s708_s1] ss:$0 sm:$0xff] (!%p225_p2) }
   0x8   : > { %571 = vmatprep.subr.bf16.mxu0 (!%p225_p2), %v598_v1  ;;  %v547_v18 = vld [vmem:[%s709_s2] ss:$0 sm:$0xff] (!%p225_p2) }
   0x9   : > { %v535_v21 = vld [vmem:[%s712_s5] ss:$0 sm:$0xff] (!%p225_p2) }
   0xb   : > { %572 = vmatpush3.bf16.msra.mxu0 (!%p225_p2), %v598_v1 }
   0xc   : > { %573 = vmatprep.subr.bf16.mxu0 (!%p225_p2), %v599_v2 }
   0xd   : > { %s715_s25 = smov (!%p260_p3, %s529_s25), 15 }
   0xe   : > { %s530_s30 = sshll.u32 %s715_s25, 2  ;;  %s534_s7 = sshll.u32 %s715_s25, 3 }
   0xf   : > { %s269_s9 = scalar_lea.vmem %s710_s3, %s530_s30  ;;  %574 = vmatpush3.bf16.msra.mxu0 %v599_v2  ;;  %s263_s23 = scalar_lea.vmem %s707_s0, %s530_s30 }
  0x10   : > { %v605_v4 = vld [vmem:[%s269_s9] sm:$0xff]   ;;  %575 = vmatprep.subr.bf16.mxu0 %v600_v3  ;;  %v606_v9 = vld [vmem:[%s269_s9 + $0x8] sm:$0xff]   ;;  %s275_s10 = scalar_lea.vmem %s713_s6, %s534_s7 }
  0x11   : > { %585 = vmatprep.mubr.bf16.mxu0 %v605_v4  ;;  %v558_v10 = vld [vmem:[%s263_s23 + $0x8] sm:$0xff]   ;;  %v551_v11 = vld [vmem:[%s263_s23] sm:$0xff]  }
  0x12   : > { %v556_v12 = vunpack.c.l.bf16 %v558_v10  ;;  %v552_v14 = vunpack.c.l.bf16 %v551_v11  ;;  %v557_v15 = vunpack.c.h.bf16 %v558_v10  ;;  %v553_v16 = vunpack.c.h.bf16 %v551_v11 }
  0x13   : > { %576 = vmatpush3.bf16.msra.mxu0 %v600_v3 }
  0x14   : > { %577 = vmatprep.subr.bf16.mxu0 %v601_v5  ;;  %v431_v17 = vmul.f32 %v556_v12, %v546_v13  ;;  %v429_v19 = vmul.f32 %v552_v14, %v546_v13  ;;  %v432_v20 = vmul.f32 %v557_v15, %v546_v13  ;;  %v430_v22 = vmul.f32 %v553_v16, %v546_v13 }
  0x16   : > { %v442_v23 = vadd.f32 %v547_v18, %v431_v17  ;;  %v440_v25 = vadd.f32 %v547_v18, %v429_v19  ;;  %v443_v28 = vadd.f32 %v547_v18, %v432_v20  ;;  %v441_v31 = vadd.f32 %v547_v18, %v430_v22 }
  0x17   : > { %578 = vmatpush3.bf16.msra.mxu0 %v601_v5 }
  0x18   : > { %579 = vmatprep.subr.bf16.mxu0 %v602_v6 }
  0x1b   : > { %580 = vmatpush3.bf16.msra.mxu0 %v602_v6 }
  0x1c   : > { %581 = vmatprep.subr.bf16.mxu0 %v603_v7 }
  0x1f   : > { %582 = vmatpush3.bf16.msra.mxu0 %v603_v7 }
  0x20   : > { %583 = vmatprep.subr.bf16.mxu0 %v604_v8 }
  0x23   : > { %584 = vmatpush3.bf16.msra.mxu0 %v604_v8 }
  0x26   : > { %586 = vmatmul.mubr.bf16.vlgmr.msra.gmra.mrb[0].mxu0 %v606_v9 }
  0xf9   : > { %v587_v24 = vpop.f32.mrb[0].mxu0 }
  0xfa   : > { %v408_v26 = vadd.f32 %v587_v24, %v535_v21  ;;  %v399_v27 = vpop.f32.mrb[1].mxu0 }
  0xfb   : > { %v400_v29 = vadd.f32 %v535_v21, %v399_v27  ;;  %v588_v30 = vpop.f32.mrb[2].mxu0 }
  0xfc   : > { %v446_v32 = vadd.f32 %v442_v23, %v408_v26  ;;  %v411_v33 = vadd.f32 %v588_v30, %v535_v21  ;;  %v402_v34 = vpop.f32.mrb[3].mxu0 }
  0xfd   : > { %v444_v35 = vadd.f32 %v440_v25, %v400_v29  ;;  %v403_v36 = vadd.f32 %v535_v21, %v402_v34 }
  0xfe   : > { %v450_v37 = vmax.f32 %v446_v32, 0.0  ;;  %v447_v38 = vadd.f32 %v443_v28, %v411_v33 }
  0xff   : > { %v448_v39 = vmax.f32 %v444_v35, 0.0  ;;  %v445_v40 = vadd.f32 %v441_v31, %v403_v36 }
 0x100   : > { %454 = vst [vmem:[%s275_s10 + $0x10] sm:$0xff] %v450_v37  ;;  %v451_v41 = vmax.f32 %v447_v38, 0.0 }
 0x101   : > { %452 = vst [vmem:[%s275_s10] sm:$0xff] %v448_v39  ;;  %v449_v42 = vmax.f32 %v445_v40, 0.0 }
 0x102   : > { %455 = vst [vmem:[%s275_s10 + $0x18] sm:$0xff] %v451_v41 }
 0x103   : > { %453 = vst [vmem:[%s275_s10 + $0x8] sm:$0xff] %v449_v42 }
 0x104 PF: > { %s16_s21 = sadd.s32 1, %s613_s21  }
 0x105   : > { %p13_p4 = scmp.ge.s32.totalorder %s16_s21, 6  }
 0x107   :  { %15 = sbr.rel (!%p13_p4) target bundleno = 1 (0x1), region = 77 }

// kernel: basicblock_forward.6
= control target key start
LH: loop header
LB: loop body
LE: loop exit
PB: predicated region body
PF: predicated region fallthrough
CT: control target
= control target key end

     0   :  { %s2797_s15 = smov 0   ;;  %s2799_s16 = smov 0   ;;  %s3200_s0 = inlined_call_operand.vmem [shape: bf16[2,10,10,128], index: 0, kind: input, shape index: {}]   ;;  %s3201_s1 = inlined_call_operand.vmem [shape: bf16[9,128,128], index: 1, kind: input, shape index: {}]   ;;  %s3202_s2 = inlined_call_operand.vmem [shape: bf16[128,128], index: 2, kind: output, shape index: {0}]   ;;  %s3203_s3 = inlined_call_operand.vmem [shape: f32[4,1,128], index: 3, kind: output, shape index: {1}]   ;;  %s3204_s4 = inlined_call_operand.vmem [shape: f32[4,1,128], index: 4, kind: output, shape index: {2}]  }
   0x1   :  { %s2801_s17 = smov 0   ;;  %s2803_s18 = smov 0  }
   0x2   :  { %s2805_s19 = smov 0  }
   0x3 LB: > { %s24_s20 = sadd.s32 1, %s2762_s17  ;;  %s27_s21 = sadd.s32 1, %s2766_s18  ;;  %s2770_s19 = sphi %s2805_s19, %s15_s19   ;;  %s2766_s18 = sphi %s2803_s18, %s3212_s18   ;;  %s2762_s17 = sphi %s2801_s17, %s3211_s17   ;;  %s2758_s16 = sphi %s2799_s16, %s3210_s16   ;;  %s2754_s15 = sphi %s2797_s15, %s3209_s15  }
   0x4   : > { %p25_p0 = scmp.ge.s32.totalorder %s24_s20, 2  ;;  %p2002_p1 = scmp.ge.s32.totalorder %s2770_s19, 1 }
   0x5   : > { %p191_p2 = scmp.lt.s32.totalorder %s2770_s19, 5 }
   0x6   : > { %s3214_s20 = smov (%p25_p0, %s24_s20), 0  ;;  %s3216_s21 = smov (!%p25_p0, %s27_s21), %s2766_s18 }
   0x7   : > { %p192_p3 = pnand %p2002_p1, %p191_p2  ;;  %p29_p4 = scmp.ge.s32.totalorder %s3216_s21, 2 }
   0x8   : > { %v2654_v0 = vld [vmem:[%s3201_s1] sm:$0xff] (!%p192_p3)   ;;  %p229_p5 = scmp.lt.s32.totalorder (!%p192_p3), %s2758_s16, 1  ;;  %v2656_v2 = vld [vmem:[%s3201_s1 + $0x8] sm:$0xff] (!%p192_p3)   ;;  %v2658_v4 = vld [vmem:[%s3201_s1 + $0x10] sm:$0xff] (!%p192_p3)   ;;  %s2293_s26 = sshll.u32 (!%p192_p3), %s2754_s15, 5  ;;  %vm625_vm3 = vcmask (!%p192_p3), 1042432  }
   0x9   : > { %s3218_s21 = smov (%p29_p4, %s3216_s21), 0  ;;  %195 = sbr.rel (%p192_p3) target bundleno = 410 (0x19a), region = 28 }
   0xa   : > { %v2655_v1 = vld [vmem:[%s3201_s1 + $0x100] sm:$0xff] (!%p192_p3)   ;;  %2401 = vmatprep.subr.bf16.mxu1 (!%p192_p3), %v2654_v0  ;;  %v2657_v3 = vld [vmem:[%s3201_s1 + $0x108] sm:$0xff] (!%p192_p3)   ;;  %v2659_v5 = vld [vmem:[%s3201_s1 + $0x110] sm:$0xff] (!%p192_p3)   ;;  %vm416_vm0 = vsmask.f32 (!%p192_p3), 3328  ;;  %vm626_vm4 = vcmask (!%p192_p3), 1046532  }
   0xb   : > { %2481 = vmatprep.subr.bf16.mxu0 (!%p192_p3), %v2655_v1  ;;  %2402 = vmatpush3.bf16.msra.mxu1 (!%p192_p3), %v2654_v0  ;;  %v2660_v6 = vld [vmem:[%s3201_s1 + $0x18] sm:$0xff] (!%p192_p3)   ;;  %v2662_v8 = vld [vmem:[%s3201_s1 + $0x20] sm:$0xff] (!%p192_p3)   ;;  %v2664_v10 = vld [vmem:[%s3201_s1 + $0x28] sm:$0xff] (!%p192_p3)   ;;  %vm417_vm1 = vsmask.f32 (!%p192_p3), 7440 }
   0xc   : > { %2482 = vmatpush3.bf16.msra.mxu0 (!%p192_p3), %v2655_v1  ;;  %2403 = vmatprep.subr.bf16.mxu1 (!%p192_p3), %v2656_v2  ;;  %v2661_v7 = vld [vmem:[%s3201_s1 + $0x118] sm:$0xff] (!%p192_p3)   ;;  %v2663_v9 = vld [vmem:[%s3201_s1 + $0x120] sm:$0xff] (!%p192_p3)   ;;  %v2665_v12 = vld [vmem:[%s3201_s1 + $0x128] sm:$0xff] (!%p192_p3)  }
   0xd   : > { %2483 = vmatprep.subr.bf16.mxu0 (!%p192_p3), %v2657_v3  ;;  %v2666_v18 = vld [vmem:[%s3201_s1 + $0x30] sm:$0xff] (!%p192_p3)   ;;  %v2668_v27 = vld [vmem:[%s3201_s1 + $0x38] sm:$0xff] (!%p192_p3)   ;;  %vm2894_vm2 = vmor (!%p192_p3), %vm416_vm0, %vm417_vm1 }
   0xe   : > { %v2667_v23 = vld [vmem:[%s3201_s1 + $0x130] sm:$0xff] (!%p192_p3)   ;;  %v2669_v30 = vld [vmem:[%s3201_s1 + $0x138] sm:$0xff] (!%p192_p3)   ;;  %v2671_v46 = vld [vmem:[%s3201_s1 + $0x40] sm:$0xff] (!%p192_p3)  }
   0xf   : > { %2404 = vmatpush3.bf16.msra.mxu1 (!%p192_p3), %v2656_v2  ;;  %v2672_v52 = vld [vmem:[%s3201_s1 + $0x140] sm:$0xff] (!%p192_p3)   ;;  %v2674_v63 = vld [vmem:[%s3201_s1 + $0x48] sm:$0xff] (!%p192_p3)   ;;  %vm2945_vm5 = vmor (!%p192_p3), %vm625_vm3, %vm626_vm4 }
  0x10   : > { %s230_s6 = scalar_select %p229_p5, %s2758_s16, 1  ;;  %2484 = vmatpush3.bf16.msra.mxu0 %v2657_v3  ;;  %2405 = vmatprep.subr.bf16.mxu1 %v2658_v4  ;;  %v2675_v3 = vld [vmem:[%s3201_s1 + $0x148] sm:$0xff]  }
  0x11   : > { %2485 = vmatprep.subr.bf16.mxu0 %v2659_v5  ;;  %v2725_v33 = vld [vmem:[%s3201_s1 + $0x208] sm:$0xff]  }
  0x12   : > { %s2613_s11 = smul.u32 80, %s230_s6 }
  0x13   : > { %2406 = vmatpush3.bf16.msra.mxu1 %v2658_v4 }
  0x14   : > { %2486 = vmatpush3.bf16.msra.mxu0 %v2659_v5  ;;  %2407 = vmatprep.subr.bf16.mxu1 %v2660_v6  ;;  %s233_s25 = scalar_lea.vmem %s3200_s0, %s2613_s11  ;;  %v2676_v5 = vld [vmem:[%s3201_s1 + $0x50] sm:$0xff]  }
  0x15   : > { %2487 = vmatprep.subr.bf16.mxu0 %v2661_v7  ;;  %s2870_s5 = scalar_lea.vmem %s233_s25, %s2293_s26 }
  0x16   : > { %v2670_v11 = vld [vmem:[%s2870_s5] ss:$8 sps:$4 sm:$0xff]   ;;  %v2111_v14 = vld [vmem:[%s2870_s5 + $0xc] sm:$0x1]  ;;  %v2112_v15 = vld [vmem:[%s2870_s5 + $0x10] sm:$0xf] }
  0x17   : > { %2408 = vmatpush3.bf16.msra.mxu1 %v2660_v6  ;;  %2417 = vmatprep.mubr.bf16.mxu1 %v2670_v11  ;;  %v2110_v13 = vld [vmem:[%s2870_s5 + $0x8] sm:$0xf]  ;;  %v2113_v19 = vld [vmem:[%s2870_s5 + $0x14] sm:$0x1]  ;;  %v942_v20 = vshll.u32 %v2111_v14, 16  ;;  %v947_v21 = vshrl.u32 %v2112_v15, 16 }
  0x18   : > { %2488 = vmatpush3.bf16.msra.mxu0 %v2661_v7  ;;  %2409 = vmatprep.subr.bf16.mxu1 %v2662_v8  ;;  %v933_v16 = vshrl.u32 %v2110_v13, 16  ;;  %v936_v17 = vshll.u32 %v2110_v13, 16  ;;  %v950_v22 = vshll.u32 %v2112_v15, 16  ;;  %v956_v26 = vshll.u32 %v2113_v19, 16  ;;  %v2114_v36 = vld [vmem:[%s2870_s5 + $0x18] sm:$0xf] }
  0x19   : > { %2489 = vmatprep.subr.bf16.mxu0 %v2663_v9  ;;  %v949_v28 = vrot.slane %v947_v21, 4  ;;  %v944_v32 = vrot.slane %v942_v20, 5  ;;  %v2115_v37 = vld [vmem:[%s2870_s5 + $0x1c] sm:$0x1]  ;;  %v2116_v39 = vld [vmem:[%s2870_s5 + $0x20] sm:$0xf] }
  0x1a   : > { %v935_v24 = vrot.slane %v933_v16, 4  ;;  %v938_v25 = vrot.slane %v936_v17, 5  ;;  %v952_v29 = vrot.slane %v950_v22, 5  ;;  %v958_v35 = vrot.slane %v956_v26, 5  ;;  %v2117_v40 = vld [vmem:[%s2870_s5 + $0x24] sm:$0x1] }
  0x1b   : > { %2410 = vmatpush3.bf16.msra.mxu1 %v2662_v8  ;;  %v961_v41 = vshrl.u32 %v2114_v36, 16  ;;  %v964_v43 = vshll.u32 %v2114_v36, 16  ;;  %v970_v44 = vshll.u32 %v2115_v37, 16  ;;  %v975_v45 = vshrl.u32 %v2116_v39, 16  ;;  %v2673_v53 = vld [vmem:[%s2870_s5 + $0x10] ss:$8 sps:$4 sm:$0xff]  }
  0x1c   : > { %2490 = vmatpush3.bf16.msra.mxu0 %v2663_v9  ;;  %2411 = vmatprep.subr.bf16.mxu1 %v2664_v10  ;;  %v939_v31 = vor.u32 %v938_v25, %v935_v24  ;;  %v953_v34 = vor.u32 %v952_v29, %v949_v28  ;;  %v978_v49 = vshll.u32 %v2116_v39, 16  ;;  %v984_v50 = vshll.u32 %v2117_v40, 16  ;;  %v2677_v6 = vld [vmem:[%s3201_s1 + $0x150] sm:$0xff]   ;;  %v2678_v7 = vld [vmem:[%s3201_s1 + $0x58] sm:$0xff]   ;;  %v408_v8 = vld [vmem:[%s2870_s5] sm:$0xf] }
  0x1d   : > { %2491 = vmatprep.subr.bf16.mxu0 %v2665_v12  ;;  %v963_v48 = vrot.slane %v961_v41, 4  ;;  %v966_v54 = vrot.slane %v964_v43, 5  ;;  %v972_v55 = vrot.slane %v970_v44, 5  ;;  %v977_v56 = vrot.slane %v975_v45, 4  ;;  %v409_v9 = vld [vmem:[%s2870_s5 + $0x4] sm:$0x1] }
  0x1e   : > { %v940_v38 = vrot.slane %v939_v31, 4  ;;  %v954_v42 = vrot.slane %v953_v34, 4  ;;  %v980_v58 = vrot.slane %v978_v49, 5  ;;  %v986_v59 = vrot.slane %v984_v50, 5  ;;  %v411_v11 = vld [vmem:[%s2870_s5 + $0xc] sm:$0x1] }
  0x1f   : > { %2412 = vmatpush3.bf16.msra.mxu1 %v2664_v10  ;;  %v967_v60 = vor.u32 %v966_v54, %v963_v48  ;;  %v410_v10 = vld [vmem:[%s2870_s5 + $0x8] sm:$0xf]  ;;  %v423_v13 = vshll.u32 %v408_v8, 16  ;;  %v429_v14 = vshll.u32 %v409_v9, 16  ;;  %v2679_v16 = vld [vmem:[%s3201_s1 + $0x158] sm:$0xff]   ;;  %v2680_v19 = vld [vmem:[%s3201_s1 + $0x60] sm:$0xff]  }
  0x20   : > { %2492 = vmatpush3.bf16.msra.mxu0 %v2665_v12  ;;  %2413 = vmatprep.subr.bf16.mxu1 %v2666_v18  ;;  %v945_v47 = vsel %vm2894_vm2, %v940_v38, %v944_v32  ;;  %v959_v51 = vsel %vm2894_vm2, %v954_v42, %v958_v35  ;;  %v981_v61 = vor.u32 %v980_v58, %v977_v56  ;;  %v420_v12 = vshrl.u32 %v408_v8, 16  ;;  %v2146_v28 = vld [vmem:[%s2870_s5 + $0x10] sm:$0xe]  ;;  %v2681_v29 = vld [vmem:[%s3201_s1 + $0x160] sm:$0xff]   ;;  %v2147_v31 = vld [vmem:[%s2870_s5 + $0x14] sm:$0x1] }
  0x21   : > { %2493 = vmatprep.subr.bf16.mxu0 %v2667_v23  ;;  %v2134_v57 = vcombine.low %v945_v47, %v959_v51  ;;  %v968_v62 = vrot.slane %v967_v60, 4  ;;  %v434_v15 = vshrl.u32 %v410_v10, 16  ;;  %v437_v17 = vshll.u32 %v410_v10, 16  ;;  %v2682_v39 = vld [vmem:[%s3201_s1 + $0x68] sm:$0xff]   ;;  %v412_v42 = vld [vmem:[%s2870_s5 + $0x10] sm:$0xf] }
  0x22   : > { %v982_v0 = vrot.slane %v981_v61, 4  ;;  %v422_v20 = vrot.slane %v420_v12, 4  ;;  %v425_v21 = vrot.slane %v423_v13, 5  ;;  %v431_v24 = vrot.slane %v429_v14, 5  ;;  %v413_v43 = vld [vmem:[%s2870_s5 + $0x14] sm:$0x1] }
  0x23   : > { %2414 = vmatpush3.bf16.msra.mxu1 %v2666_v18  ;;  %2497 = vmatprep.mubr.bf16.mxu0 %v2134_v57  ;;  %v973_v1 = vsel %vm2894_vm2, %v968_v62, %v972_v55  ;;  %v443_v18 = vshll.u32 %v411_v11, 16  ;;  %v436_v22 = vrot.slane %v434_v15, 4  ;;  %v439_v25 = vrot.slane %v437_v17, 5  ;;  %v415_v47 = vld [vmem:[%s2870_s5 + $0x1c] sm:$0x1]  ;;  %v2683_v54 = vld [vmem:[%s3201_s1 + $0x168] sm:$0xff]  }
  0x24   : > { %2494 = vmatpush3.bf16.msra.mxu0 %v2667_v23  ;;  %2415 = vmatprep.subr.bf16.mxu1 %v2668_v27  ;;  %v987_v2 = vsel %vm2894_vm2, %v982_v0, %v986_v59  ;;  %v2144_v23 = vld [vmem:[%s2870_s5 + $0x8] sm:$0xe]  ;;  %v2153_v35 = vrot.slane %v2146_v28, 9  ;;  %v1144_v38 = vrot.slane %v2147_v31, 5  ;;  %v448_v48 = vshrl.u32 %v412_v42, 16  ;;  %v2684_v60 = vld [vmem:[%s3201_s1 + $0x70] sm:$0xff]  }
  0x25   : > { %2495 = vmatprep.subr.bf16.mxu0 %v2669_v30  ;;  %v2135_v4 = vcombine.low %v973_v1, %v987_v2  ;;  %v2152_v32 = vrot.slane %v2144_v23, 9  ;;  %v440_v36 = vor.u32 %v439_v25, %v436_v22  ;;  %v445_v37 = vrot.slane %v443_v18, 5  ;;  %v2149_v59 = vld [vmem:[%s2870_s5 + $0x1c] sm:$0x1]  ;;  %v2150_v1 = vld [vmem:[%s2870_s5 + $0x20] sm:$0xe] }
  0x26   : > { %v1145_v45 = vsel %vm2945_vm5, %v2153_v35, %v1144_v38  ;;  %v451_v51 = vshll.u32 %v412_v42, 16  ;;  %v450_v56 = vrot.slane %v448_v48, 4  ;;  %v471_v0 = vshll.u32 %v415_v47, 16  ;;  %v2688_v17 = vld [vmem:[%s3201_s1 + $0x80] sm:$0xff]   ;;  %v2692_v28 = vld [vmem:[%s3201_s1 + $0x90] sm:$0xff]   ;;  %v2698_v47 = vld [vmem:[%s3201_s1 + $0xa8] sm:$0xff]  }
  0x27   : > { %2416 = vmatpush3.bf16.msra.mxu1 %v2668_v27  ;;  %v2145_v27 = vld [vmem:[%s2870_s5 + $0xc] sm:$0x1]  ;;  %v441_v44 = vrot.slane %v440_v36, 4  ;;  %v1148_v10 = vrot.slane %v2149_v59, 5  ;;  %v2155_v13 = vrot.slane %v2150_v1, 9  ;;  %v2693_v42 = vld [vmem:[%s3201_s1 + $0x190] sm:$0xff]  }
  0x28   : > { %2496 = vmatpush3.bf16.msra.mxu0 %v2669_v30  ;;  %2421 = vmatprep.subr.bf16.mxu1 %v2671_v46  ;;  %v426_v30 = vor.u32 %v425_v21, %v422_v20  ;;  %v1140_v34 = vrot.slane %v2145_v27, 5  ;;  %v453_v62 = vrot.slane %v451_v51, 5  ;;  %v473_v8 = vrot.slane %v471_v0, 5  ;;  %v2689_v21 = vld [vmem:[%s3201_s1 + $0x180] sm:$0xff]   ;;  %v2691_v27 = vld [vmem:[%s3201_s1 + $0x188] sm:$0xff]   ;;  %v2702_v59 = vld [vmem:[%s3201_s1 + $0xb8] sm:$0xff]  }
  0x29   : > { %2501 = vmatprep.subr.bf16.mxu0 %v2672_v52  ;;  %v446_v55 = vsel %vm2894_vm2, %v441_v44, %v445_v37  ;;  %v611_v31 = vld [vmem:[%s2870_s5 + $0x8] sm:$0xe]  ;;  %v2695_v44 = vld [vmem:[%s3201_s1 + $0x198] sm:$0xff]   ;;  %v613_v48 = vld [vmem:[%s2870_s5 + $0x10] sm:$0xe] }
  0x2a   : > { %2418 = vmatmul.mubr.bf16.vlgmr.msra.gmra.mrb[0].mxu1 %v2673_v53  ;;  %v427_v40 = vrot.slane %v426_v30, 4  ;;  %v1141_v41 = vsel %vm2945_vm5, %v2152_v32, %v1140_v34  ;;  %v2148_v53 = vld [vmem:[%s2870_s5 + $0x18] sm:$0xe]  ;;  %v610_v30 = vld [vmem:[%s2870_s5 + $0x4] sm:$0x1]  ;;  %v2049_v36 = vrot.slane %v611_v31, 9 }
  0x2b   : > { %2422 = vmatpush3.bf16.msra.mxu1 %v2671_v46  ;;  %2498 = vmatmul.mubr.bf16.vlgmr.msra.gmra.mrb[0].mxu0 %v2135_v4  ;;  %v414_v46 = vld [vmem:[%s2870_s5 + $0x18] sm:$0xf]  ;;  %v2172_v50 = vcombine.low %v1141_v41, %v1145_v45  ;;  %v2151_v4 = vld [vmem:[%s2870_s5 + $0x24] sm:$0x1]  ;;  %v2154_v9 = vrot.slane %v2148_v53, 9  ;;  %v630_v35 = vrot.slane %v610_v30, 5 }
  0x2c   : > { %2423 = vmatprep.subr.bf16.mxu1 %v2674_v63  ;;  %2502 = vmatpush3.bf16.msra.mxu0 %v2672_v52  ;;  %v432_v49 = vsel %vm2894_vm2, %v427_v40, %v431_v24  ;;  %v457_v52 = vshll.u32 %v413_v43, 16  ;;  %v462_v57 = vshrl.u32 %v414_v46, 16  ;;  %v465_v58 = vshll.u32 %v414_v46, 16  ;;  %v2690_v24 = vld [vmem:[%s3201_s1 + $0x88] sm:$0xff]   ;;  %v2705_v40 = vld [vmem:[%s2870_s5 + $0x10] ss:$8 sps:$4 sm:$0xff]  }
  0x2d   : > { %2503 = vmatprep.subr.bf16.mxu0 %v2675_v3  ;;  %v2038_v61 = vcombine.low %v432_v49, %v446_v55  ;;  %2517 = vmatprep.mubr.bf16.mxu0 %v2172_v50  ;;  %v1152_v15 = vrot.slane %v2151_v4, 5  ;;  %v1149_v22 = vsel %vm2945_vm5, %v2154_v9, %v1148_v10  ;;  %v612_v32 = vld [vmem:[%s2870_s5 + $0xc] sm:$0x1]  ;;  %v2694_v43 = vld [vmem:[%s3201_s1 + $0x98] sm:$0xff]   ;;  %v2696_v45 = vld [vmem:[%s3201_s1 + $0xa0] sm:$0xff]   ;;  %v2050_v55 = vrot.slane %v613_v48, 9 }
  0x2e   : > { %v464_v2 = vrot.slane %v462_v57, 4  ;;  %v634_v37 = vrot.slane %v612_v32, 5  ;;  %v2697_v46 = vld [vmem:[%s3201_s1 + $0x1a0] sm:$0xff]   ;;  %v2699_v49 = vld [vmem:[%s3201_s1 + $0x1a8] sm:$0xff]   ;;  %v2700_v50 = vld [vmem:[%s3201_s1 + $0xb0] sm:$0xff]  }
  0x2f   : > { %2424 = vmatpush3.bf16.msra.mxu1 %v2674_v63  ;;  %v459_v63 = vrot.slane %v457_v52, 5  ;;  %2437 = vmatprep.mubr.bf16.mxu1 %v2038_v61  ;;  %v1153_v23 = vsel %vm2945_vm5, %v2155_v13, %v1152_v15  ;;  %v614_v51 = vld [vmem:[%s2870_s5 + $0x14] sm:$0x1]  ;;  %v615_v52 = vld [vmem:[%s2870_s5 + $0x18] sm:$0xe]  ;;  %v2704_v61 = vld [vmem:[%s3201_s1 + $0xc0] sm:$0xff]  }
  0x30   : > { %2425 = vmatprep.subr.bf16.mxu1 %v2676_v5  ;;  %2504 = vmatpush3.bf16.msra.mxu0 %v2675_v3  ;;  %v467_v3 = vrot.slane %v465_v58, 5  ;;  %v2173_v25 = vcombine.low %v1149_v22, %v1153_v23  ;;  %v616_v53 = vld [vmem:[%s2870_s5 + $0x1c] sm:$0x1]  ;;  %v2051_v57 = vrot.slane %v615_v52, 9  ;;  %v2707_v23 = vld [vmem:[%s2870_s5 + $0x20] ss:$8 sps:$4 sm:$0xff]  }
  0x31   : > { %2505 = vmatprep.subr.bf16.mxu0 %v2677_v6  ;;  %v642_v58 = vrot.slane %v616_v53, 5  ;;  %v2711_v31 = vld [vmem:[%s3201_s1 + $0x1d0] sm:$0xff]   ;;  %v2712_v32 = vld [vmem:[%s3201_s1 + $0xd8] sm:$0xff]  }
  0x32   : > { %v468_v11 = vor.u32 %v467_v3, %v464_v2  ;;  %v2216_v2 = vld [vmem:[%s2870_s5 + $0x18] sm:$0xf]  ;;  %v2217_v3 = vld [vmem:[%s2870_s5 + $0x1c] sm:$0x1] }
  0x33   : > { %2426 = vmatpush3.bf16.msra.mxu1 %v2676_v5  ;;  %v2685_v5 = vld [vmem:[%s3201_s1 + $0x170] sm:$0xff]   ;;  %v643_v1 = vsel %vm2945_vm5, %v2051_v57, %v642_v58  ;;  %v1466_v9 = vshll.u32 %v2217_v3, 16  ;;  %v2720_v57 = vld [vmem:[%s3201_s1 + $0xf8] sm:$0xff]  }
  0x34   : > { %2427 = vmatprep.subr.bf16.mxu1 %v2678_v7  ;;  %2506 = vmatpush3.bf16.msra.mxu0 %v2677_v6  ;;  %v2686_v6 = vld [vmem:[%s3201_s1 + $0x78] sm:$0xff]   ;;  %v469_v14 = vrot.slane %v468_v11, 4  ;;  %v2248_v58 = vld [vmem:[%s2870_s5 + $0x10] sm:$0xe] }
  0x35   : > { %2507 = vmatprep.subr.bf16.mxu0 %v2679_v16  ;;  %v2256_v3 = vrot.slane %v2248_v58, 9 }
  0x37   : > { %2428 = vmatpush3.bf16.msra.mxu1 %v2678_v7  ;;  %v454_v7 = vor.u32 %v453_v62, %v450_v56  ;;  %v638_v56 = vrot.slane %v614_v51, 5  ;;  %v2214_v62 = vld [vmem:[%s2870_s5 + $0x10] sm:$0xf]  ;;  %v2221_v51 = vld [vmem:[%s2870_s5 + $0x2c] sm:$0x1] }
  0x38   : > { %2429 = vmatprep.subr.bf16.mxu1 %v2680_v19  ;;  %2508 = vmatpush3.bf16.msra.mxu0 %v2679_v16  ;;  %v2687_v16 = vld [vmem:[%s3201_s1 + $0x178] sm:$0xff]   ;;  %v1443_v4 = vshrl.u32 %v2214_v62, 16 }
  0x39   : > { %2509 = vmatprep.subr.bf16.mxu0 %v2681_v29  ;;  %v455_v12 = vrot.slane %v454_v7, 4  ;;  %v639_v0 = vsel %vm2945_vm5, %v2050_v55, %v638_v56  ;;  %v1457_v7 = vshrl.u32 %v2216_v2, 16  ;;  %v1494_v55 = vshll.u32 %v2221_v51, 16  ;;  %v2719_v56 = vld [vmem:[%s3201_s1 + $0x1f0] sm:$0xff]  }
  0x3a   : > { %v1445_v10 = vrot.slane %v1443_v4, 4 }
  0x3b   : > { %2430 = vmatpush3.bf16.msra.mxu1 %v2680_v19  ;;  %v460_v18 = vsel %vm2894_vm2, %v455_v12, %v459_v63  ;;  %v474_v19 = vsel %vm2894_vm2, %v469_v14, %v473_v8  ;;  %v2215_v63 = vld [vmem:[%s2870_s5 + $0x14] sm:$0x1]  ;;  %v1460_v8 = vshll.u32 %v2216_v2, 16  ;;  %v2069_v12 = vcombine.low %v639_v0, %v643_v1  ;;  %v2721_v2 = vld [vmem:[%s3201_s1 + $0x1f8] sm:$0xff]  }
  0x3c   : > { %2431 = vmatprep.subr.bf16.mxu1 %v2682_v39  ;;  %2510 = vmatpush3.bf16.msra.mxu0 %v2681_v29  ;;  %v2039_v20 = vcombine.low %v460_v18, %v474_v19  ;;  %v609_v29 = vld [vmem:[%s2870_s5] sm:$0xe]  ;;  %v1459_v13 = vrot.slane %v1457_v7, 4  ;;  %v2708_v18 = vld [vmem:[%s3201_s1 + $0xc8] sm:$0xff]   ;;  %v1496_v1 = vrot.slane %v1494_v55, 5 }
  0x3d   : > { %2511 = vmatprep.subr.bf16.mxu0 %v2683_v54  ;;  %v2048_v34 = vrot.slane %v609_v29, 9  ;;  %v1462_v14 = vrot.slane %v1460_v8, 5  ;;  %v2723_v7 = vld [vmem:[%s2870_s5 + $0x18] ss:$8 sps:$4 sm:$0xff]  }
  0x3f   : > { %2432 = vmatpush3.bf16.msra.mxu1 %v2682_v39  ;;  %v631_v38 = vsel %vm2945_vm5, %v2048_v34, %v630_v35  ;;  %v635_v39 = vsel %vm2945_vm5, %v2049_v36, %v634_v37  ;;  %v1463_v19 = vor.u32 %v1462_v14, %v1459_v13  ;;  %v2713_v34 = vld [vmem:[%s3201_s1 + $0x1d8] sm:$0xff]   ;;  %v2714_v35 = vld [vmem:[%s3201_s1 + $0xe0] sm:$0xff]   ;;  %v2220_v37 = vld [vmem:[%s2870_s5 + $0x28] sm:$0xf] }
  0x40   : > { %2433 = vmatprep.subr.bf16.mxu1 %v2684_v60  ;;  %2512 = vmatpush3.bf16.msra.mxu0 %v2683_v54  ;;  %v2068_v41 = vcombine.low %v631_v38, %v635_v39  ;;  %v2701_v54 = vld [vmem:[%s3201_s1 + $0x1b0] sm:$0xff]   ;;  %v2218_v36 = vld [vmem:[%s2870_s5 + $0x20] sm:$0xf] }
  0x41   : > { %2513 = vmatprep.subr.bf16.mxu0 %v2685_v5  ;;  %v1471_v38 = vshrl.u32 %v2218_v36, 16  ;;  %v1474_v39 = vshll.u32 %v2218_v36, 16 }
  0x43   : > { %2434 = vmatpush3.bf16.msra.mxu1 %v2684_v60  ;;  %v2703_v60 = vld [vmem:[%s3201_s1 + $0x1b8] sm:$0xff]  }
  0x44   : > { %2435 = vmatprep.subr.bf16.mxu1 %v2686_v6  ;;  %2514 = vmatpush3.bf16.msra.mxu0 %v2685_v5  ;;  %v1446_v5 = vshll.u32 %v2214_v62, 16 }
  0x45   : > { %2515 = vmatprep.subr.bf16.mxu0 %v2687_v16 }
  0x46   : > { %v1448_v11 = vrot.slane %v1446_v5, 5 }
  0x47   : > { %2436 = vmatpush3.bf16.msra.mxu1 %v2686_v6  ;;  %v1452_v6 = vshll.u32 %v2215_v63, 16 }
  0x48   : > { %2441 = vmatprep.subr.bf16.mxu1 %v2688_v17  ;;  %2516 = vmatpush3.bf16.msra.mxu0 %v2687_v16  ;;  %v1449_v15 = vor.u32 %v1448_v11, %v1445_v10  ;;  %v2724_v10 = vld [vmem:[%s3201_s1 + $0x200] sm:$0xff]  }
  0x49   : > { %2521 = vmatprep.subr.bf16.mxu0 %v2689_v21  ;;  %v1454_v16 = vrot.slane %v1452_v6, 5 }
  0x4a   : > { %2438 = vmatmul.mubr.bf16.vlgmr.msra.gmra.mrb[0].mxu1 %v2039_v20  ;;  %v1468_v20 = vrot.slane %v1466_v9, 5  ;;  %v1450_v22 = vrot.slane %v1449_v15, 4  ;;  %v2726_v15 = vld [vmem:[%s3201_s1 + $0x210] sm:$0xff]  }
  0x4b   : > { %2442 = vmatpush3.bf16.msra.mxu1 %v2688_v17  ;;  %2518 = vmatmul.mubr.bf16.vlgmr.msra.gmra.mrb[0].mxu0 %v2173_v25  ;;  %v2706_v17 = vld [vmem:[%s3201_s1 + $0x1c0] sm:$0xff]   ;;  %v2709_v25 = vld [vmem:[%s3201_s1 + $0x1c8] sm:$0xff]  }
  0x4c   : > { %2443 = vmatprep.subr.bf16.mxu1 %v2690_v24  ;;  %2522 = vmatpush3.bf16.msra.mxu0 %v2689_v21  ;;  %v2722_v21 = vld [vmem:[%s2870_s5 + $0x8] ss:$8 sps:$4 sm:$0xff]  }
  0x4d   : > { %2523 = vmatprep.subr.bf16.mxu0 %v2691_v27  ;;  %2457 = vmatprep.mubr.bf16.mxu1 %v2068_v41  ;;  %v1488_v41 = vshll.u32 %v2220_v37, 16 }
  0x4e   : > { %2537 = vmatprep.mubr.bf16.mxu0 %v2705_v40  ;;  %v1485_v40 = vshrl.u32 %v2220_v37, 16 }
  0x4f   : > { %2444 = vmatpush3.bf16.msra.mxu1 %v2690_v24  ;;  %v1464_v24 = vrot.slane %v1463_v19, 4  ;;  %v1490_v48 = vrot.slane %v1488_v41, 5  ;;  %v2730_v19 = vld [vmem:[%s3201_s1 + $0x230] sm:$0xff]  }
  0x50   : > { %2445 = vmatprep.subr.bf16.mxu1 %v2692_v28  ;;  %2524 = vmatpush3.bf16.msra.mxu0 %v2691_v27  ;;  %v2710_v27 = vld [vmem:[%s3201_s1 + $0xd0] sm:$0xff]  }
  0x51   : > { %2525 = vmatprep.subr.bf16.mxu0 %v2693_v42  ;;  %v1469_v29 = vsel %vm2894_vm2, %v1464_v24, %v1468_v20  ;;  %v2252_v20 = vld [vmem:[%s2870_s5 + $0x20] sm:$0xe] }
  0x52   : > { %v2258_v24 = vrot.slane %v2252_v20, 9 }
  0x53   : > { %2446 = vmatpush3.bf16.msra.mxu1 %v2692_v28  ;;  %v1455_v28 = vsel %vm2894_vm2, %v1450_v22, %v1454_v16  ;;  %v2727_v16 = vld [vmem:[%s3201_s1 + $0x218] sm:$0xff]   ;;  %v2254_v22 = vld [vmem:[%s2870_s5 + $0x28] sm:$0xe] }
  0x54   : > { %2447 = vmatprep.subr.bf16.mxu1 %v2694_v43  ;;  %2526 = vmatpush3.bf16.msra.mxu0 %v2693_v42  ;;  %v2238_v30 = vcombine.low %v1455_v28, %v1469_v29  ;;  %v2715_v42 = vld [vmem:[%s3201_s1 + $0x1e0] sm:$0xff]   ;;  %v2731_v29 = vld [vmem:[%s3201_s1 + $0x238] sm:$0xff]  }
  0x55   : > { %2527 = vmatprep.subr.bf16.mxu0 %v2695_v44 }
  0x57   : > { %2448 = vmatpush3.bf16.msra.mxu1 %v2694_v43  ;;  %v2716_v43 = vld [vmem:[%s3201_s1 + $0xe8] sm:$0xff]  }
  0x58   : > { %2449 = vmatprep.subr.bf16.mxu1 %v2696_v45  ;;  %2528 = vmatpush3.bf16.msra.mxu0 %v2695_v44  ;;  %v2717_v44 = vld [vmem:[%s3201_s1 + $0x1e8] sm:$0xff]  }
  0x59   : > { %2529 = vmatprep.subr.bf16.mxu0 %v2697_v46 }
  0x5b   : > { %2450 = vmatpush3.bf16.msra.mxu1 %v2696_v45  ;;  %v1473_v45 = vrot.slane %v1471_v38, 4 }
  0x5c   : > { %2451 = vmatprep.subr.bf16.mxu1 %v2698_v47  ;;  %2530 = vmatpush3.bf16.msra.mxu0 %v2697_v46  ;;  %v1476_v46 = vrot.slane %v1474_v39, 5 }
  0x5d   : > { %2531 = vmatprep.subr.bf16.mxu0 %v2699_v49 }
  0x5e   : > { %v1477_v52 = vor.u32 %v1476_v46, %v1473_v45 }
  0x5f   : > { %2452 = vmatpush3.bf16.msra.mxu1 %v2698_v47  ;;  %v1487_v47 = vrot.slane %v1485_v40, 4 }
  0x60   : > { %2453 = vmatprep.subr.bf16.mxu1 %v2700_v50  ;;  %2532 = vmatpush3.bf16.msra.mxu0 %v2699_v49  ;;  %v2718_v49 = vld [vmem:[%s3201_s1 + $0xf0] sm:$0xff]   ;;  %v1478_v62 = vrot.slane %v1477_v52, 4 }
  0x61   : > { %2533 = vmatprep.subr.bf16.mxu0 %v2701_v54 }
  0x63   : > { %2454 = vmatpush3.bf16.msra.mxu1 %v2700_v50  ;;  %v2219_v50 = vld [vmem:[%s2870_s5 + $0x24] sm:$0x1] }
  0x64   : > { %2455 = vmatprep.subr.bf16.mxu1 %v2702_v59  ;;  %2534 = vmatpush3.bf16.msra.mxu0 %v2701_v54  ;;  %v1480_v53 = vshll.u32 %v2219_v50, 16  ;;  %v1491_v54 = vor.u32 %v1490_v48, %v1487_v47 }
  0x65   : > { %2535 = vmatprep.subr.bf16.mxu0 %v2703_v60 }
  0x66   : > { %v1482_v63 = vrot.slane %v1480_v53, 5  ;;  %v1492_v0 = vrot.slane %v1491_v54, 4 }
  0x67   : > { %2456 = vmatpush3.bf16.msra.mxu1 %v2702_v59  ;;  %v2249_v59 = vld [vmem:[%s2870_s5 + $0x14] sm:$0x1] }
  0x68   : > { %2461 = vmatprep.subr.bf16.mxu1 %v2704_v61  ;;  %2536 = vmatpush3.bf16.msra.mxu0 %v2703_v60  ;;  %v2250_v60 = vld [vmem:[%s2870_s5 + $0x18] sm:$0xe]  ;;  %v1650_v4 = vrot.slane %v2249_v59, 5  ;;  %v1483_v8 = vsel %vm2894_vm2, %v1478_v62, %v1482_v63  ;;  %v1497_v9 = vsel %vm2894_vm2, %v1492_v0, %v1496_v1 }
  0x69   : > { %2541 = vmatprep.subr.bf16.mxu0 %v2706_v17  ;;  %v2257_v5 = vrot.slane %v2250_v60, 9  ;;  %v2239_v13 = vcombine.low %v1483_v8, %v1497_v9 }
  0x6a   : > { %2458 = vmatmul.mubr.bf16.vlgmr.msra.gmra.mrb[0].mxu1 %v2069_v12  ;;  %v1651_v11 = vsel %vm2945_vm5, %v2256_v3, %v1650_v4 }
  0x6b   : > { %2462 = vmatpush3.bf16.msra.mxu1 %v2704_v61  ;;  %2477 = vmatprep.mubr.bf16.mxu1 %v2722_v21  ;;  %v2251_v61 = vld [vmem:[%s2870_s5 + $0x1c] sm:$0x1]  ;;  %v2253_v21 = vld [vmem:[%s2870_s5 + $0x24] sm:$0x1] }
  0x6c   : > { %2463 = vmatprep.subr.bf16.mxu1 %v2708_v18  ;;  %2538 = vmatmul.mubr.bf16.vlgmr.msra.gmra.mrb[0].mxu0 %v2707_v23  ;;  %v1654_v6 = vrot.slane %v2251_v61, 5  ;;  %v2255_v23 = vld [vmem:[%s2870_s5 + $0x2c] sm:$0x1]  ;;  %s2004_s5 = sshll.u32 %s2758_s16, 1 }
  0x6d   : > { %2542 = vmatpush3.bf16.msra.mxu0 %v2706_v17  ;;  %2557 = vmatprep.mubr.bf16.mxu0 %v2238_v30  ;;  %v2728_v17 = vld [vmem:[%s3201_s1 + $0x220] sm:$0xff]   ;;  %v1662_v28 = vrot.slane %v2255_v23, 5  ;;  %s3171_s27 = sadd.s32 %s2754_s15, %s2004_s5 }
  0x6e   : > { %2543 = vmatprep.subr.bf16.mxu0 %v2709_v25  ;;  %v1655_v12 = vsel %vm2945_vm5, %v2257_v5, %v1654_v6  ;;  %s2005_s28 = sshll.u32 %s3171_s27, 2  ;;  %p246_p7 = scmp.lt.s32.totalorder %s3171_s27, 3 }
  0x6f   : > { %2464 = vmatpush3.bf16.msra.mxu1 %v2708_v18  ;;  %v2276_v14 = vcombine.low %v1651_v11, %v1655_v12  ;;  %v2729_v18 = vld [vmem:[%s3201_s1 + $0x228] sm:$0xff]   ;;  %p237_p6 = scmp.lt.s32.totalorder %s2005_s28, 15 }
  0x70   : > { %2465 = vmatprep.subr.bf16.mxu1 %v2710_v27  ;;  %s3222_s27 = smov (!%p246_p7, %s3171_s27), 3 }
  0x71   : > { %2544 = vmatpush3.bf16.msra.mxu0 %v2709_v25  ;;  %v1658_v25 = vrot.slane %v2253_v21, 5  ;;  %s3220_s28 = smov (!%p237_p6, %s2005_s28), 15  ;;  %s248_s8 = scalar_lea.vmem %s3203_s3, %s3222_s27 }
  0x72   : > { %2545 = vmatprep.subr.bf16.mxu0 %v2711_v31  ;;  %s2006_s29 = sshll.u32 %s3220_s28, 2  ;;  %s255_s11 = scalar_lea.vmem %s3204_s4, %s3222_s27 }
  0x73   : > { %2466 = vmatpush3.bf16.msra.mxu1 %v2710_v27  ;;  %v2259_v27 = vrot.slane %v2254_v22, 9  ;;  %v1659_v30 = vsel %vm2945_vm5, %v2258_v24, %v1658_v25  ;;  %s240_s7 = scalar_lea.vmem %s3202_s2, %s2006_s29 }
  0x74   : > { %2467 = vmatprep.subr.bf16.mxu1 %v2712_v32 }
  0x75   : > { %2546 = vmatpush3.bf16.msra.mxu0 %v2711_v31  ;;  %v1663_v31 = vsel %vm2945_vm5, %v2259_v27, %v1662_v28 }
  0x76   : > { %2547 = vmatprep.subr.bf16.mxu0 %v2713_v34 }
  0x77   : > { %2468 = vmatpush3.bf16.msra.mxu1 %v2712_v32  ;;  %v2277_v32 = vcombine.low %v1659_v30, %v1663_v31 }
  0x78   : > { %2469 = vmatprep.subr.bf16.mxu1 %v2714_v35 }
  0x79   : > { %2548 = vmatpush3.bf16.msra.mxu0 %v2713_v34 }
  0x7a   : > { %2549 = vmatprep.subr.bf16.mxu0 %v2715_v42 }
  0x7b   : > { %2470 = vmatpush3.bf16.msra.mxu1 %v2714_v35 }
  0x7c   : > { %2471 = vmatprep.subr.bf16.mxu1 %v2716_v43 }
  0x7d   : > { %2550 = vmatpush3.bf16.msra.mxu0 %v2715_v42 }
  0x7e   : > { %2551 = vmatprep.subr.bf16.mxu0 %v2717_v44 }
  0x7f   : > { %2472 = vmatpush3.bf16.msra.mxu1 %v2716_v43 }
  0x80   : > { %2473 = vmatprep.subr.bf16.mxu1 %v2718_v49 }
  0x81   : > { %2552 = vmatpush3.bf16.msra.mxu0 %v2717_v44 }
  0x82   : > { %2553 = vmatprep.subr.bf16.mxu0 %v2719_v56 }
  0x83   : > { %2474 = vmatpush3.bf16.msra.mxu1 %v2718_v49 }
  0x84   : > { %2475 = vmatprep.subr.bf16.mxu1 %v2720_v57 }
  0x85   : > { %2554 = vmatpush3.bf16.msra.mxu0 %v2719_v56 }
  0x86   : > { %2555 = vmatprep.subr.bf16.mxu0 %v2721_v2 }
  0x87   : > { %2476 = vmatpush3.bf16.msra.mxu1 %v2720_v57 }
  0x89   : > { %2556 = vmatpush3.bf16.msra.mxu0 %v2721_v2 }
  0x8a   : > { %2478 = vmatmul.mubr.bf16.vlgmr.msra.gmra.mrb[0].mxu1 %v2723_v7  ;;  %2561 = vmatprep.subr.bf16.mxu0 %v2724_v10 }
  0x8c   : > { %2558 = vmatmul.mubr.bf16.vlgmr.msra.gmra.mrb[0].mxu0 %v2239_v13 }
  0x8d   : > { %2562 = vmatpush3.bf16.msra.mxu0 %v2724_v10  ;;  %2577 = vmatprep.mubr.bf16.mxu0 %v2276_v14 }
  0x8e   : > { %2563 = vmatprep.subr.bf16.mxu0 %v2725_v33 }
  0x91   : > { %2564 = vmatpush3.bf16.msra.mxu0 %v2725_v33 }
  0x92   : > { %2565 = vmatprep.subr.bf16.mxu0 %v2726_v15 }
  0x95   : > { %2566 = vmatpush3.bf16.msra.mxu0 %v2726_v15 }
  0x96   : > { %2567 = vmatprep.subr.bf16.mxu0 %v2727_v16 }
  0x99   : > { %2568 = vmatpush3.bf16.msra.mxu0 %v2727_v16 }
  0x9a   : > { %2569 = vmatprep.subr.bf16.mxu0 %v2728_v17 }
  0x9d   : > { %2570 = vmatpush3.bf16.msra.mxu0 %v2728_v17 }
  0x9e   : > { %2571 = vmatprep.subr.bf16.mxu0 %v2729_v18 }
  0xa1   : > { %2572 = vmatpush3.bf16.msra.mxu0 %v2729_v18 }
  0xa2   : > { %2573 = vmatprep.subr.bf16.mxu0 %v2730_v19 }
  0xa5   : > { %2574 = vmatpush3.bf16.msra.mxu0 %v2730_v19 }
  0xa6   : > { %2575 = vmatprep.subr.bf16.mxu0 %v2731_v29 }
  0xa9   : > { %2576 = vmatpush3.bf16.msra.mxu0 %v2731_v29 }
  0xac   : > { %2578 = vmatmul.mubr.bf16.vlgmr.msra.gmra.mrb[0].mxu0 %v2277_v32 }
 0x15d   : > { %v2479_v34 = vpop.f32.mrb[0].mxu1 }
 0x15e   : > { %v901_v35 = vpop.f32.mrb[1].mxu1 }
 0x15f   : > { %v2480_v36 = vpop.f32.mrb[2].mxu1 }
 0x160   : > { %v904_v37 = vpop.f32.mrb[3].mxu1 }
 0x17f   : > { %v2579_v38 = vpop.f32.mrb[0].mxu0 }
 0x180   : > { %v2581_v39 = vadd.f32 %v2579_v38, %v2479_v34  ;;  %v1775_v40 = vpop.f32.mrb[1].mxu0 }
 0x181   : > { %v2582_v26 = vadd.f32 %v1775_v40, %v901_v35  ;;  %v2580_v41 = vpop.f32.mrb[2].mxu0 }
 0x182   : > { %v2583_v42 = vadd.f32 %v2580_v41, %v2480_v36  ;;  %v1778_v43 = vpop.f32.mrb[3].mxu0  ;;  %v1834_v50 = vmul.f32 %v2581_v39, %v2581_v39 }
 0x183   : > { %v2584_v44 = vadd.f32 %v1778_v43, %v904_v37  ;;  %v1832_v46 = vmul.f32 %v2582_v26, %v2582_v26 }
 0x184   : > { %v2308_v45 = vpack.c.bf16 %v2583_v42, %v2581_v39  ;;  %v1835_v53 = vmul.f32 %v2583_v42, %v2583_v42 }
 0x185   : > { %v2303_v47 = vpack.c.bf16 %v2584_v44, %v2582_v26  ;;  %v1822_v48 = vadd.f32 %v2584_v44, %v2582_v26  ;;  %v1833_v49 = vmul.f32 %v2584_v44, %v2584_v44 }
 0x186   : > { %2310 = vst [vmem:[%s240_s7 + $0x8] sm:$0xff] %v2308_v45  }
 0x187   : > { %2304 = vst [vmem:[%s240_s7] sm:$0xff] %v2303_v47   ;;  %v1823_v51 = vadd.f32 %v2581_v39, %v1822_v48  ;;  %v1836_v52 = vadd.f32 %v1833_v49, %v1832_v46 }
 0x189   : > { %v1824_v54 = vadd.f32 %v2583_v42, %v1823_v51  ;;  %v1837_v55 = vadd.f32 %v1836_v52, %v1834_v50 }
 0x18b   : > { %v1825_v56 = vrot.slane %v1824_v54, 4  ;;  %v1838_v57 = vadd.f32 %v1837_v55, %v1835_v53 }
 0x18d   : > { %v1826_v58 = vadd.f32 %v1825_v56, %v1824_v54  ;;  %v1839_v59 = vrot.slane %v1838_v57, 4 }
 0x18f   : > { %v1827_v60 = vrot.slane %v1826_v58, 2  ;;  %v1840_v61 = vadd.f32 %v1839_v59, %v1838_v57 }
 0x191   : > { %v1828_v62 = vadd.f32 %v1827_v60, %v1826_v58  ;;  %v1841_v63 = vrot.slane %v1840_v61, 2 }
 0x193   : > { %v1829_v0 = vrot.slane %v1828_v62, 1  ;;  %v1842_v1 = vadd.f32 %v1841_v63, %v1840_v61 }
 0x195   : > { %v1830_v2 = vadd.f32 %v1829_v0, %v1828_v62  ;;  %v1843_v3 = vrot.slane %v1842_v1, 1 }
 0x197   : > { %1831 = vst [vmem:[%s248_s8] sm:$0x1] %v1830_v2  ;;  %v1844_v4 = vadd.f32 %v1843_v3, %v1842_v1 }
 0x199   : > { %1845 = vst [vmem:[%s255_s11] sm:$0x1] %v1844_v4 }
 0x19a PF: > { %s15_s19 = sadd.s32 1, %s2770_s19   ;;  %s3209_s15 = smov %s2762_s17 }
 0x19b   : > { %p12_p8 = scmp.ge.s32.totalorder %s15_s19, 6   ;;  %s3210_s16 = smov %s2766_s18 }
 0x19c   : > { %s3211_s17 = smov %s3214_s20  ;;  %s3212_s18 = smov %s3218_s21 }
 0x19d   :  { %14 = sbr.rel (!%p12_p8) target bundleno = 3 (0x3), region = 93 }

</bundles_post_ra>
